<compile_context>
chip_gen: v7x
topology: tpu7x:2x2x1
jax: 0.10.0
libtpu: 0.0.40
codegen_flags: <defaults>
</compile_context>

<pallas_src>
import functools
import jax
import jax.numpy as jnp
from jax.experimental import pallas as pl
from jax.experimental.pallas import tpu as pltpu

NUM_HEADS = 8
BN_EPS = 1e-5


# ----------------------------------------------------------------------------
# Fused kernel: one batch element per grid step, everything resident in VMEM.
# ----------------------------------------------------------------------------
def _fused_kernel(x_ref,
                  w0_ref, b0_ref, w1_ref, b1_ref,
                  wq_ref, wk_ref,
                  w2_ref, b2_ref, w3_ref, b3_ref,
                  f1w_ref, f1b_ref, f2w_ref, f2b_ref,
                  act_ref, logit_ref, *, ksize):

    def conv_block(h, w_ref, b_ref):
        # h: (L, Cin) f32, w_ref: (K*Cin, Cout) bf16 (BN folded), b_ref: (1, Cout) f32
        L = h.shape[0]
        Lc = L - ksize + 1
        # im2col: one lane-dense MXU matmul instead of K tiny dots
        patches = jnp.concatenate([h[t:t + Lc, :] for t in range(ksize)], axis=1)
        y = jnp.dot(patches.astype(jnp.bfloat16), w_ref[...],
                    preferred_element_type=jnp.float32) + b_ref[...]
        y = jnp.maximum(y, 0.0)                           # ReLU
        return jnp.maximum(y[:Lc - 1, :], y[1:, :])       # MaxPool1d(2, 1) along length (sublanes)

    h = x_ref[0].astype(jnp.float32)                      # (S, d_in): NLC, no transpose needed
    h = conv_block(h, w0_ref, b0_ref)                     # (S-K,   64)
    h = conv_block(h, w1_ref, b1_ref)                     # (N,    128)

    # --- attention weighting: per-position weight = mean_h sum_i softmax_j(q_i . k_j * scale) ---
    N, C = h.shape
    D = C // NUM_HEADS
    hb = h.astype(jnp.bfloat16)
    q = jnp.dot(hb, wq_ref[...], preferred_element_type=jnp.float32)   # (N, C); scale folded in Wq
    k = jnp.dot(hb, wk_ref[...], preferred_element_type=jnp.float32)   # (N, C)
    wcol = jnp.zeros((N, 1), jnp.float32)
    for hd in range(NUM_HEADS):                           # static unroll over 8 heads
        qh = q[:, hd * D:(hd + 1) * D]
        kh = k[:, hd * D:(hd + 1) * D]
        # scores transposed: sT[j, i] = k_j . q_i  -> softmax over j (axis 0)
        sT = jax.lax.dot_general(kh, qh, (((1,), (1,)), ((), ())),
                                 preferred_element_type=jnp.float32)   # (Nk, Nq)
        sT = sT - jnp.max(sT, axis=0, keepdims=True)
        e = jnp.exp(sT)
        p = e * pl.reciprocal(jnp.sum(e, axis=0, keepdims=True), approx=True)
        wcol = wcol + jnp.sum(p, axis=1, keepdims=True)   # sum over queries i -> (Nk, 1) column
    h = h * (wcol * (1.0 / NUM_HEADS))                    # reweight each position (row)

    h = conv_block(h, w2_ref, b2_ref)                     # (..., 256)
    h = conv_block(h, w3_ref, b3_ref)                     # (..., 128)

    # --- mean over length + Linear + ReLU + Linear + sigmoid ---
    L3 = h.shape[0]
    mean_row = jnp.full((1, L3), 1.0 / L3, jnp.float32)
    feat = jnp.dot(mean_row, h, preferred_element_type=jnp.float32)            # (1, 128)
    hid = jnp.maximum(jnp.dot(feat, f1w_ref[...],
                              preferred_element_type=jnp.float32) + f1b_ref[...], 0.0)
    logits = jnp.dot(hid, f2w_ref[...], preferred_element_type=jnp.float32) + f2b_ref[...]
    logit_ref[0] = logits
    act_ref[0] = jax.nn.sigmoid(logits)


# ----------------------------------------------------------------------------
# Trace-time weight preparation (BN folding, im2col weight layout, bf16 casts)
# ----------------------------------------------------------------------------
def _fold_bn_conv(w, b, g, beta, mu, var):
    """w: (Cout, Cin, K) torch layout -> (K*Cin, Cout) bf16 with BN folded in."""
    Cout, Cin, K = w.shape
    s = g * jax.lax.rsqrt(var + BN_EPS)                   # (Cout,)
    w_f = w * s[:, None, None]
    b_f = (b - mu) * s + beta
    w_flat = jnp.transpose(w_f, (2, 1, 0)).reshape(K * Cin, Cout)   # [t*Cin + c, o]
    return w_flat.astype(jnp.bfloat16), b_f.reshape(1, Cout).astype(jnp.float32)


def _const_spec(a):
    nd = a.ndim
    return pl.BlockSpec(a.shape, lambda bb, _nd=nd: (0,) * _nd)


@jax.jit
def cnn_attn_forward(x, x_len, params):
    del x_len                                             # unused in the torch forward too
    B, S, d_in = x.shape
    K = params["conv0_w"].shape[2]

    conv_wb = [_fold_bn_conv(params[f"conv{i}_w"], params[f"conv{i}_b"],
                             params[f"bn{i}_g"], params[f"bn{i}_b"],
                             params[f"bn{i}_m"], params[f"bn{i}_v"]) for i in range(4)]
    head_dim = 128 // NUM_HEADS
    wq = (params["attn_q_wT"] * (float(head_dim) ** -0.5)).astype(jnp.bfloat16)  # scale folded
    wk = params["attn_k_wT"].astype(jnp.bfloat16)
    f1w = params["fc1_w"].T.astype(jnp.float32)           # (128, d_fc)
    f1b = params["fc1_b"].reshape(1, -1).astype(jnp.float32)
    f2w = params["fc2_w"].T.astype(jnp.float32)           # (d_fc, n_out)
    f2b = params["fc2_b"].reshape(1, -1).astype(jnp.float32)
    n_out = f2w.shape[1]

    ops = [conv_wb[0][0], conv_wb[0][1], conv_wb[1][0], conv_wb[1][1],
           wq, wk,
           conv_wb[2][0], conv_wb[2][1], conv_wb[3][0], conv_wb[3][1],
           f1w, f1b, f2w, f2b]

    act3, logit3 = pl.pallas_call(
        functools.partial(_fused_kernel, ksize=K),
        out_shape=(jax.ShapeDtypeStruct((B, 1, n_out), jnp.float32),
                   jax.ShapeDtypeStruct((B, 1, n_out), jnp.float32)),
        grid=(B,),
        in_specs=[pl.BlockSpec((1, S, d_in), lambda bb: (bb, 0, 0))]
                 + [_const_spec(o) for o in ops],
        out_specs=(pl.BlockSpec((1, 1, n_out), lambda bb: (bb, 0, 0)),
                   pl.BlockSpec((1, 1, n_out), lambda bb: (bb, 0, 0))),
        compiler_params=pltpu.CompilerParams(dimension_semantics=("parallel",)),
    )(x.astype(jnp.float32), *ops)

    return act3[:, 0, :], logit3[:, 0, :]                 # (activation, logits), like torch


# ----------------------------------------------------------------------------
# Deterministic parameter init (same shapes as the torch module __init__)
# ----------------------------------------------------------------------------
def init_params(key, d_in, kernel_size, d_fc_out, n_targets):
    ks = jax.random.split(key, 16)
    p = {}
    conv_dims = [(64, d_in), (128, 64), (256, 128), (128, 256)]
    ki = 0
    for i, (co, ci) in enumerate(conv_dims):
        fan = float(ci * kernel_size) ** -0.5
        p[f"conv{i}_w"] = jax.random.normal(ks[ki], (co, ci, kernel_size), jnp.float32) * fan; ki += 1
        p[f"conv{i}_b"] = jax.random.normal(ks[ki], (co,), jnp.float32) * 0.01; ki += 1
        p[f"bn{i}_g"] = jnp.ones((co,), jnp.float32)
        p[f"bn{i}_b"] = jnp.zeros((co,), jnp.float32)
        p[f"bn{i}_m"] = jnp.zeros((co,), jnp.float32)
        p[f"bn{i}_v"] = jnp.ones((co,), jnp.float32)
    # Attention (out_dim=128, num_heads=8, qkv_bias=False). Only q and k are needed.
    wq = jax.random.normal(ks[ki], (128, 128), jnp.float32) * (128.0 ** -0.5); ki += 1
    wkv = jax.random.normal(ks[ki], (256, 128), jnp.float32) * (128.0 ** -0.5); ki += 1
    p["attn_q_wT"] = wq.T                                  # (in, out)
    p["attn_k_wT"] = wkv[:128].T                           # k = first half of kv
    # OutLayer
    p["fc1_w"] = jax.random.normal(ks[ki], (d_fc_out, 128), jnp.float32) * (128.0 ** -0.5); ki += 1
    p["fc1_b"] = jax.random.normal(ks[ki], (d_fc_out,), jnp.float32) * 0.01; ki += 1
    p["fc2_w"] = jax.random.normal(ks[ki], (n_targets, d_fc_out), jnp.float32) * (float(d_fc_out) ** -0.5); ki += 1
    p["fc2_b"] = jnp.zeros((n_targets,), jnp.float32)      # nn.init.constant_(bias, 0.0)
    return p


# ----------------------------------------------------------------------------
# Pure-JAX f32 reference (for a sanity check)
# ----------------------------------------------------------------------------
def _ref_conv_block(h, w, b, g, beta, mu, var):
    Cout, Cin, K = w.shape
    Lc = h.shape[-1] - K + 1
    acc = jnp.zeros((h.shape[0], Cout, Lc), jnp.float32)
    for t in range(K):
        acc = acc + jnp.einsum("oc,bcl->bol", w[:, :, t], h[:, :, t:t + Lc])
    acc = acc + b[None, :, None]
    acc = (acc - mu[None, :, None]) * (g / jnp.sqrt(var + BN_EPS))[None, :, None] + beta[None, :, None]
    acc = jnp.maximum(acc, 0.0)
    return jnp.maximum(acc[:, :, :-1], acc[:, :, 1:])


def ref_forward(x, params):
    h = jnp.transpose(x, (0, 2, 1)).astype(jnp.float32)
    for i in range(2):
        h = _ref_conv_block(h, params[f"conv{i}_w"], params[f"conv{i}_b"],
                            params[f"bn{i}_g"], params[f"bn{i}_b"],
                            params[f"bn{i}_m"], params[f"bn{i}_v"])
    proj = jnp.transpose(h, (0, 2, 1))                     # (B, N, 128)
    B, N, C = proj.shape
    H, D = NUM_HEADS, C // NUM_HEADS
    q = proj @ params["attn_q_wT"]
    k = proj @ params["attn_k_wT"]
    qh = q.reshape(B, N, H, D).transpose(0, 2, 1, 3)
    kh = k.reshape(B, N, H, D).transpose(0, 2, 1, 3)
    attn = jnp.einsum("bhid,bhjd->bhij", qh, kh) * (float(D) ** -0.5)
    attn = jax.nn.softmax(attn, axis=-1)
    hvec = attn.mean(axis=1).sum(axis=1)                   # (B, N)
    h = h * hvec[:, None, :]
    for i in range(2, 4):
        h = _ref_conv_block(h, params[f"conv{i}_w"], params[f"conv{i}_b"],
                            params[f"bn{i}_g"], params[f"bn{i}_b"],
                            params[f"bn{i}_m"], params[f"bn{i}_v"])
    feat = h.mean(axis=-1)
    hid = jnp.maximum(feat @ params["fc1_w"].T + params["fc1_b"], 0.0)
    logits = hid @ params["fc2_w"].T + params["fc2_b"]
    return jax.nn.sigmoid(logits), logits


if __name__ == "__main__":
    # params: d_in=4, kernel_size=3, d_fc_out=32, n_targets=3, linear_dropout=0.0
    B, S, D_IN, KSZ, D_FC, N_TGT = 2, 20, 4, 3, 32, 3

    key = jax.random.PRNGKey(0)
    k_x, k_p = jax.random.split(key)
    x = jax.random.normal(k_x, (B, S, D_IN), jnp.float32)
    x_len = jnp.full((B,), S, jnp.int32)                   # unused, kept for signature parity
    params = init_params(k_p, D_IN, KSZ, D_FC, N_TGT)

    activation, logits = cnn_attn_forward(x, x_len, params)
    jax.block_until_ready((activation, logits))

    ref_act, ref_logits = ref_forward(x, params)
    assert activation.shape == (B, N_TGT) and logits.shape == (B, N_TGT)
    # bf16 matmul operands + approx reciprocal => slightly looser tolerance than pure-f32 reference.
    assert jnp.allclose(logits, ref_logits, rtol=2e-2, atol=2e-2), \
        float(jnp.max(jnp.abs(logits - ref_logits)))
    assert jnp.allclose(activation, ref_act, rtol=2e-2, atol=2e-2), \
        float(jnp.max(jnp.abs(activation - ref_act)))

    print("KERNEL_OK")
</pallas_src>

<mosaic_0001>
module attributes {stable_mosaic.version = 11 : i64} {
  func.func @_fused_kernel(%arg0: i32, %arg1: memref<1x20x4xf32, #tpu.memory_space<vmem>>, %arg2: memref<12x64xbf16, #tpu.memory_space<vmem>>, %arg3: memref<1x64xf32, #tpu.memory_space<vmem>>, %arg4: memref<192x128xbf16, #tpu.memory_space<vmem>>, %arg5: memref<1x128xf32, #tpu.memory_space<vmem>>, %arg6: memref<128x128xbf16, #tpu.memory_space<vmem>>, %arg7: memref<128x128xbf16, #tpu.memory_space<vmem>>, %arg8: memref<384x256xbf16, #tpu.memory_space<vmem>>, %arg9: memref<1x256xf32, #tpu.memory_space<vmem>>, %arg10: memref<768x128xbf16, #tpu.memory_space<vmem>>, %arg11: memref<1x128xf32, #tpu.memory_space<vmem>>, %arg12: memref<128x32xf32, #tpu.memory_space<vmem>>, %arg13: memref<1x32xf32, #tpu.memory_space<vmem>>, %arg14: memref<32x3xf32, #tpu.memory_space<vmem>>, %arg15: memref<1x3xf32, #tpu.memory_space<vmem>>, %arg16: memref<1x1x3xf32, #tpu.memory_space<vmem>>, %arg17: memref<1x1x3xf32, #tpu.memory_space<vmem>>) attributes {dimension_semantics = [#tpu.dimension_semantics<parallel>], iteration_bounds = array<i64: 2>, scalar_prefetch = 0 : i64, scratch_operands = 0 : i64, tpu.core_type = #tpu.core_type<tc>, window_params = [{transform_indices = @transform_0, window_bounds = array<i64: 1, 20, 4>}, {pipeline_mode = #tpu.pipeline_mode<synchronous>, transform_indices = @transform_1, window_bounds = array<i64: 12, 64>}, {pipeline_mode = #tpu.pipeline_mode<synchronous>, transform_indices = @transform_2, window_bounds = array<i64: 1, 64>}, {pipeline_mode = #tpu.pipeline_mode<synchronous>, transform_indices = @transform_3, window_bounds = array<i64: 192, 128>}, {pipeline_mode = #tpu.pipeline_mode<synchronous>, transform_indices = @transform_4, window_bounds = array<i64: 1, 128>}, {pipeline_mode = #tpu.pipeline_mode<synchronous>, transform_indices = @transform_5, window_bounds = array<i64: 128, 128>}, {pipeline_mode = #tpu.pipeline_mode<synchronous>, transform_indices = @transform_6, window_bounds = array<i64: 128, 128>}, {pipeline_mode = #tpu.pipeline_mode<synchronous>, transform_indices = @transform_7, window_bounds = array<i64: 384, 256>}, {pipeline_mode = #tpu.pipeline_mode<synchronous>, transform_indices = @transform_8, window_bounds = array<i64: 1, 256>}, {pipeline_mode = #tpu.pipeline_mode<synchronous>, transform_indices = @transform_9, window_bounds = array<i64: 768, 128>}, {pipeline_mode = #tpu.pipeline_mode<synchronous>, transform_indices = @transform_10, window_bounds = array<i64: 1, 128>}, {pipeline_mode = #tpu.pipeline_mode<synchronous>, transform_indices = @transform_11, window_bounds = array<i64: 128, 32>}, {pipeline_mode = #tpu.pipeline_mode<synchronous>, transform_indices = @transform_12, window_bounds = array<i64: 1, 32>}, {pipeline_mode = #tpu.pipeline_mode<synchronous>, transform_indices = @transform_13, window_bounds = array<i64: 32, 3>}, {pipeline_mode = #tpu.pipeline_mode<synchronous>, transform_indices = @transform_14, window_bounds = array<i64: 1, 3>}, {transform_indices = @transform_15, window_bounds = array<i64: 1, 1, 3>}, {transform_indices = @transform_16, window_bounds = array<i64: 1, 1, 3>}]} {
    %c0 = arith.constant 0 : index
    %c0_0 = arith.constant 0 : index
    %c0_1 = arith.constant 0 : index
    %0 = vector.load %arg1[%c0, %c0_0, %c0_1] : memref<1x20x4xf32, #tpu.memory_space<vmem>>, vector<1x20x4xf32>
    %1 = vector.shape_cast %0 : vector<1x20x4xf32> to vector<20x4xf32>
    %2 = vector.extract_strided_slice %1 {offsets = [0, 0], sizes = [18, 4], strides = [1, 1]} : vector<20x4xf32> to vector<18x4xf32>
    %3 = vector.extract_strided_slice %1 {offsets = [1, 0], sizes = [18, 4], strides = [1, 1]} : vector<20x4xf32> to vector<18x4xf32>
    %4 = vector.extract_strided_slice %1 {offsets = [2, 0], sizes = [18, 4], strides = [1, 1]} : vector<20x4xf32> to vector<18x4xf32>
    %5 = tpu.concatenate %2, %3, %4 in 1 : vector<18x4xf32>, vector<18x4xf32>, vector<18x4xf32> -> vector<18x12xf32>
    %6 = arith.truncf %5 : vector<18x12xf32> to vector<18x12xbf16>
    %c0_2 = arith.constant 0 : index
    %c0_3 = arith.constant 0 : index
    %7 = vector.load %arg2[%c0_2, %c0_3] : memref<12x64xbf16, #tpu.memory_space<vmem>>, vector<12x64xbf16>
    %cst = arith.constant dense<0.000000e+00> : vector<18x64xf32>
    %8 = tpu.matmul %6, %7, %cst {dimension_numbers = #tpu.dot_dimension_numbers<[1], [0], [0], [1], [0, 0, 1, 1], [], []>} : vector<18x12xbf16>, vector<12x64xbf16>, vector<18x64xf32> -> vector<18x64xf32>
    %c0_4 = arith.constant 0 : index
    %c0_5 = arith.constant 0 : index
    %9 = vector.load %arg3[%c0_4, %c0_5] : memref<1x64xf32, #tpu.memory_space<vmem>>, vector<1x64xf32>
    %10 = vector.broadcast %9 : vector<1x64xf32> to vector<18x64xf32>
    %11 = arith.addf %8, %10 : vector<18x64xf32>
    %cst_6 = arith.constant 0.000000e+00 : f32
    %12 = vector.broadcast %cst_6 : f32 to vector<18x64xf32>
    %13 = arith.maximumf %11, %12 : vector<18x64xf32>
    %14 = vector.extract_strided_slice %13 {offsets = [0, 0], sizes = [17, 64], strides = [1, 1]} : vector<18x64xf32> to vector<17x64xf32>
    %15 = vector.extract_strided_slice %13 {offsets = [1, 0], sizes = [17, 64], strides = [1, 1]} : vector<18x64xf32> to vector<17x64xf32>
    %16 = arith.maximumf %14, %15 : vector<17x64xf32>
    %17 = vector.extract_strided_slice %16 {offsets = [0, 0], sizes = [15, 64], strides = [1, 1]} : vector<17x64xf32> to vector<15x64xf32>
    %18 = vector.extract_strided_slice %16 {offsets = [1, 0], sizes = [15, 64], strides = [1, 1]} : vector<17x64xf32> to vector<15x64xf32>
    %19 = vector.extract_strided_slice %16 {offsets = [2, 0], sizes = [15, 64], strides = [1, 1]} : vector<17x64xf32> to vector<15x64xf32>
    %20 = tpu.concatenate %17, %18, %19 in 1 : vector<15x64xf32>, vector<15x64xf32>, vector<15x64xf32> -> vector<15x192xf32>
    %21 = arith.truncf %20 : vector<15x192xf32> to vector<15x192xbf16>
    %c0_7 = arith.constant 0 : index
    %c0_8 = arith.constant 0 : index
    %22 = vector.load %arg4[%c0_7, %c0_8] : memref<192x128xbf16, #tpu.memory_space<vmem>>, vector<192x128xbf16>
    %cst_9 = arith.constant dense<0.000000e+00> : vector<15x128xf32>
    %23 = tpu.matmul %21, %22, %cst_9 {dimension_numbers = #tpu.dot_dimension_numbers<[1], [0], [0], [1], [0, 0, 1, 1], [], []>} : vector<15x192xbf16>, vector<192x128xbf16>, vector<15x128xf32> -> vector<15x128xf32>
    %c0_10 = arith.constant 0 : index
    %c0_11 = arith.constant 0 : index
    %24 = vector.load %arg5[%c0_10, %c0_11] : memref<1x128xf32, #tpu.memory_space<vmem>>, vector<1x128xf32>
    %25 = vector.broadcast %24 : vector<1x128xf32> to vector<15x128xf32>
    %26 = arith.addf %23, %25 : vector<15x128xf32>
    %cst_12 = arith.constant 0.000000e+00 : f32
    %27 = vector.broadcast %cst_12 : f32 to vector<15x128xf32>
    %28 = arith.maximumf %26, %27 : vector<15x128xf32>
    %29 = vector.extract_strided_slice %28 {offsets = [0, 0], sizes = [14, 128], strides = [1, 1]} : vector<15x128xf32> to vector<14x128xf32>
    %30 = vector.extract_strided_slice %28 {offsets = [1, 0], sizes = [14, 128], strides = [1, 1]} : vector<15x128xf32> to vector<14x128xf32>
    %31 = arith.maximumf %29, %30 : vector<14x128xf32>
    %32 = arith.truncf %31 : vector<14x128xf32> to vector<14x128xbf16>
    %c0_13 = arith.constant 0 : index
    %c0_14 = arith.constant 0 : index
    %33 = vector.load %arg6[%c0_13, %c0_14] : memref<128x128xbf16, #tpu.memory_space<vmem>>, vector<128x128xbf16>
    %cst_15 = arith.constant dense<0.000000e+00> : vector<14x128xf32>
    %34 = tpu.matmul %32, %33, %cst_15 {dimension_numbers = #tpu.dot_dimension_numbers<[1], [0], [0], [1], [0, 0, 1, 1], [], []>} : vector<14x128xbf16>, vector<128x128xbf16>, vector<14x128xf32> -> vector<14x128xf32>
    %c0_16 = arith.constant 0 : index
    %c0_17 = arith.constant 0 : index
    %35 = vector.load %arg7[%c0_16, %c0_17] : memref<128x128xbf16, #tpu.memory_space<vmem>>, vector<128x128xbf16>
    %cst_18 = arith.constant dense<0.000000e+00> : vector<14x128xf32>
    %36 = tpu.matmul %32, %35, %cst_18 {dimension_numbers = #tpu.dot_dimension_numbers<[1], [0], [0], [1], [0, 0, 1, 1], [], []>} : vector<14x128xbf16>, vector<128x128xbf16>, vector<14x128xf32> -> vector<14x128xf32>
    %cst_19 = arith.constant 0.000000e+00 : f32
    %37 = vector.broadcast %cst_19 : f32 to vector<14x1xf32>
    %38 = vector.extract_strided_slice %34 {offsets = [0, 0], sizes = [14, 16], strides = [1, 1]} : vector<14x128xf32> to vector<14x16xf32>
    %39 = vector.extract_strided_slice %36 {offsets = [0, 0], sizes = [14, 16], strides = [1, 1]} : vector<14x128xf32> to vector<14x16xf32>
    %cst_20 = arith.constant dense<0.000000e+00> : vector<14x14xf32>
    %40 = tpu.matmul %39, %38, %cst_20 {dimension_numbers = #tpu.dot_dimension_numbers<[1], [1], [0], [0], [0, 0, 1, 0], [], []>} : vector<14x16xf32>, vector<14x16xf32>, vector<14x14xf32> -> vector<14x14xf32>
    %cst_21 = arith.constant dense<0xFF800000> : vector<14xf32>
    %41 = vector.multi_reduction <maximumf>, %40, %cst_21 [0] : vector<14x14xf32> to vector<14xf32>
    %42 = vector.shape_cast %41 : vector<14xf32> to vector<1x14xf32>
    %43 = vector.broadcast %42 : vector<1x14xf32> to vector<14x14xf32>
    %44 = arith.subf %40, %43 : vector<14x14xf32>
    %45 = math.exp %44 : vector<14x14xf32>
    %cst_22 = arith.constant dense<0.000000e+00> : vector<14xf32>
    %46 = vector.multi_reduction <add>, %45, %cst_22 [0] : vector<14x14xf32> to vector<14xf32>
    %47 = vector.shape_cast %46 : vector<14xf32> to vector<1x14xf32>
    %48 = tpu.reciprocal %47 {approx = true} : vector<1x14xf32> -> vector<1x14xf32>
    %49 = vector.broadcast %48 : vector<1x14xf32> to vector<14x14xf32>
    %50 = arith.mulf %45, %49 : vector<14x14xf32>
    %cst_23 = arith.constant dense<0.000000e+00> : vector<14xf32>
    %51 = vector.multi_reduction <add>, %50, %cst_23 [1] : vector<14x14xf32> to vector<14xf32>
    %52 = vector.shape_cast %51 : vector<14xf32> to vector<14x1xf32>
    %53 = arith.addf %37, %52 : vector<14x1xf32>
    %54 = vector.extract_strided_slice %34 {offsets = [0, 16], sizes = [14, 16], strides = [1, 1]} : vector<14x128xf32> to vector<14x16xf32>
    %55 = vector.extract_strided_slice %36 {offsets = [0, 16], sizes = [14, 16], strides = [1, 1]} : vector<14x128xf32> to vector<14x16xf32>
    %cst_24 = arith.constant dense<0.000000e+00> : vector<14x14xf32>
    %56 = tpu.matmul %55, %54, %cst_24 {dimension_numbers = #tpu.dot_dimension_numbers<[1], [1], [0], [0], [0, 0, 1, 0], [], []>} : vector<14x16xf32>, vector<14x16xf32>, vector<14x14xf32> -> vector<14x14xf32>
    %cst_25 = arith.constant dense<0xFF800000> : vector<14xf32>
    %57 = vector.multi_reduction <maximumf>, %56, %cst_25 [0] : vector<14x14xf32> to vector<14xf32>
    %58 = vector.shape_cast %57 : vector<14xf32> to vector<1x14xf32>
    %59 = vector.broadcast %58 : vector<1x14xf32> to vector<14x14xf32>
    %60 = arith.subf %56, %59 : vector<14x14xf32>
    %61 = math.exp %60 : vector<14x14xf32>
    %cst_26 = arith.constant dense<0.000000e+00> : vector<14xf32>
    %62 = vector.multi_reduction <add>, %61, %cst_26 [0] : vector<14x14xf32> to vector<14xf32>
    %63 = vector.shape_cast %62 : vector<14xf32> to vector<1x14xf32>
    %64 = tpu.reciprocal %63 {approx = true} : vector<1x14xf32> -> vector<1x14xf32>
    %65 = vector.broadcast %64 : vector<1x14xf32> to vector<14x14xf32>
    %66 = arith.mulf %61, %65 : vector<14x14xf32>
    %cst_27 = arith.constant dense<0.000000e+00> : vector<14xf32>
    %67 = vector.multi_reduction <add>, %66, %cst_27 [1] : vector<14x14xf32> to vector<14xf32>
    %68 = vector.shape_cast %67 : vector<14xf32> to vector<14x1xf32>
    %69 = arith.addf %53, %68 : vector<14x1xf32>
    %70 = vector.extract_strided_slice %34 {offsets = [0, 32], sizes = [14, 16], strides = [1, 1]} : vector<14x128xf32> to vector<14x16xf32>
    %71 = vector.extract_strided_slice %36 {offsets = [0, 32], sizes = [14, 16], strides = [1, 1]} : vector<14x128xf32> to vector<14x16xf32>
    %cst_28 = arith.constant dense<0.000000e+00> : vector<14x14xf32>
    %72 = tpu.matmul %71, %70, %cst_28 {dimension_numbers = #tpu.dot_dimension_numbers<[1], [1], [0], [0], [0, 0, 1, 0], [], []>} : vector<14x16xf32>, vector<14x16xf32>, vector<14x14xf32> -> vector<14x14xf32>
    %cst_29 = arith.constant dense<0xFF800000> : vector<14xf32>
    %73 = vector.multi_reduction <maximumf>, %72, %cst_29 [0] : vector<14x14xf32> to vector<14xf32>
    %74 = vector.shape_cast %73 : vector<14xf32> to vector<1x14xf32>
    %75 = vector.broadcast %74 : vector<1x14xf32> to vector<14x14xf32>
    %76 = arith.subf %72, %75 : vector<14x14xf32>
    %77 = math.exp %76 : vector<14x14xf32>
    %cst_30 = arith.constant dense<0.000000e+00> : vector<14xf32>
    %78 = vector.multi_reduction <add>, %77, %cst_30 [0] : vector<14x14xf32> to vector<14xf32>
    %79 = vector.shape_cast %78 : vector<14xf32> to vector<1x14xf32>
    %80 = tpu.reciprocal %79 {approx = true} : vector<1x14xf32> -> vector<1x14xf32>
    %81 = vector.broadcast %80 : vector<1x14xf32> to vector<14x14xf32>
    %82 = arith.mulf %77, %81 : vector<14x14xf32>
    %cst_31 = arith.constant dense<0.000000e+00> : vector<14xf32>
    %83 = vector.multi_reduction <add>, %82, %cst_31 [1] : vector<14x14xf32> to vector<14xf32>
    %84 = vector.shape_cast %83 : vector<14xf32> to vector<14x1xf32>
    %85 = arith.addf %69, %84 : vector<14x1xf32>
    %86 = vector.extract_strided_slice %34 {offsets = [0, 48], sizes = [14, 16], strides = [1, 1]} : vector<14x128xf32> to vector<14x16xf32>
    %87 = vector.extract_strided_slice %36 {offsets = [0, 48], sizes = [14, 16], strides = [1, 1]} : vector<14x128xf32> to vector<14x16xf32>
    %cst_32 = arith.constant dense<0.000000e+00> : vector<14x14xf32>
    %88 = tpu.matmul %87, %86, %cst_32 {dimension_numbers = #tpu.dot_dimension_numbers<[1], [1], [0], [0], [0, 0, 1, 0], [], []>} : vector<14x16xf32>, vector<14x16xf32>, vector<14x14xf32> -> vector<14x14xf32>
    %cst_33 = arith.constant dense<0xFF800000> : vector<14xf32>
    %89 = vector.multi_reduction <maximumf>, %88, %cst_33 [0] : vector<14x14xf32> to vector<14xf32>
    %90 = vector.shape_cast %89 : vector<14xf32> to vector<1x14xf32>
    %91 = vector.broadcast %90 : vector<1x14xf32> to vector<14x14xf32>
    %92 = arith.subf %88, %91 : vector<14x14xf32>
    %93 = math.exp %92 : vector<14x14xf32>
    %cst_34 = arith.constant dense<0.000000e+00> : vector<14xf32>
    %94 = vector.multi_reduction <add>, %93, %cst_34 [0] : vector<14x14xf32> to vector<14xf32>
    %95 = vector.shape_cast %94 : vector<14xf32> to vector<1x14xf32>
    %96 = tpu.reciprocal %95 {approx = true} : vector<1x14xf32> -> vector<1x14xf32>
    %97 = vector.broadcast %96 : vector<1x14xf32> to vector<14x14xf32>
    %98 = arith.mulf %93, %97 : vector<14x14xf32>
    %cst_35 = arith.constant dense<0.000000e+00> : vector<14xf32>
    %99 = vector.multi_reduction <add>, %98, %cst_35 [1] : vector<14x14xf32> to vector<14xf32>
    %100 = vector.shape_cast %99 : vector<14xf32> to vector<14x1xf32>
    %101 = arith.addf %85, %100 : vector<14x1xf32>
    %102 = vector.extract_strided_slice %34 {offsets = [0, 64], sizes = [14, 16], strides = [1, 1]} : vector<14x128xf32> to vector<14x16xf32>
    %103 = vector.extract_strided_slice %36 {offsets = [0, 64], sizes = [14, 16], strides = [1, 1]} : vector<14x128xf32> to vector<14x16xf32>
    %cst_36 = arith.constant dense<0.000000e+00> : vector<14x14xf32>
    %104 = tpu.matmul %103, %102, %cst_36 {dimension_numbers = #tpu.dot_dimension_numbers<[1], [1], [0], [0], [0, 0, 1, 0], [], []>} : vector<14x16xf32>, vector<14x16xf32>, vector<14x14xf32> -> vector<14x14xf32>
    %cst_37 = arith.constant dense<0xFF800000> : vector<14xf32>
    %105 = vector.multi_reduction <maximumf>, %104, %cst_37 [0] : vector<14x14xf32> to vector<14xf32>
    %106 = vector.shape_cast %105 : vector<14xf32> to vector<1x14xf32>
    %107 = vector.broadcast %106 : vector<1x14xf32> to vector<14x14xf32>
    %108 = arith.subf %104, %107 : vector<14x14xf32>
    %109 = math.exp %108 : vector<14x14xf32>
    %cst_38 = arith.constant dense<0.000000e+00> : vector<14xf32>
    %110 = vector.multi_reduction <add>, %109, %cst_38 [0] : vector<14x14xf32> to vector<14xf32>
    %111 = vector.shape_cast %110 : vector<14xf32> to vector<1x14xf32>
    %112 = tpu.reciprocal %111 {approx = true} : vector<1x14xf32> -> vector<1x14xf32>
    %113 = vector.broadcast %112 : vector<1x14xf32> to vector<14x14xf32>
    %114 = arith.mulf %109, %113 : vector<14x14xf32>
    %cst_39 = arith.constant dense<0.000000e+00> : vector<14xf32>
    %115 = vector.multi_reduction <add>, %114, %cst_39 [1] : vector<14x14xf32> to vector<14xf32>
    %116 = vector.shape_cast %115 : vector<14xf32> to vector<14x1xf32>
    %117 = arith.addf %101, %116 : vector<14x1xf32>
    %118 = vector.extract_strided_slice %34 {offsets = [0, 80], sizes = [14, 16], strides = [1, 1]} : vector<14x128xf32> to vector<14x16xf32>
    %119 = vector.extract_strided_slice %36 {offsets = [0, 80], sizes = [14, 16], strides = [1, 1]} : vector<14x128xf32> to vector<14x16xf32>
    %cst_40 = arith.constant dense<0.000000e+00> : vector<14x14xf32>
    %120 = tpu.matmul %119, %118, %cst_40 {dimension_numbers = #tpu.dot_dimension_numbers<[1], [1], [0], [0], [0, 0, 1, 0], [], []>} : vector<14x16xf32>, vector<14x16xf32>, vector<14x14xf32> -> vector<14x14xf32>
    %cst_41 = arith.constant dense<0xFF800000> : vector<14xf32>
    %121 = vector.multi_reduction <maximumf>, %120, %cst_41 [0] : vector<14x14xf32> to vector<14xf32>
    %122 = vector.shape_cast %121 : vector<14xf32> to vector<1x14xf32>
    %123 = vector.broadcast %122 : vector<1x14xf32> to vector<14x14xf32>
    %124 = arith.subf %120, %123 : vector<14x14xf32>
    %125 = math.exp %124 : vector<14x14xf32>
    %cst_42 = arith.constant dense<0.000000e+00> : vector<14xf32>
    %126 = vector.multi_reduction <add>, %125, %cst_42 [0] : vector<14x14xf32> to vector<14xf32>
    %127 = vector.shape_cast %126 : vector<14xf32> to vector<1x14xf32>
    %128 = tpu.reciprocal %127 {approx = true} : vector<1x14xf32> -> vector<1x14xf32>
    %129 = vector.broadcast %128 : vector<1x14xf32> to vector<14x14xf32>
    %130 = arith.mulf %125, %129 : vector<14x14xf32>
    %cst_43 = arith.constant dense<0.000000e+00> : vector<14xf32>
    %131 = vector.multi_reduction <add>, %130, %cst_43 [1] : vector<14x14xf32> to vector<14xf32>
    %132 = vector.shape_cast %131 : vector<14xf32> to vector<14x1xf32>
    %133 = arith.addf %117, %132 : vector<14x1xf32>
    %134 = vector.extract_strided_slice %34 {offsets = [0, 96], sizes = [14, 16], strides = [1, 1]} : vector<14x128xf32> to vector<14x16xf32>
    %135 = vector.extract_strided_slice %36 {offsets = [0, 96], sizes = [14, 16], strides = [1, 1]} : vector<14x128xf32> to vector<14x16xf32>
    %cst_44 = arith.constant dense<0.000000e+00> : vector<14x14xf32>
    %136 = tpu.matmul %135, %134, %cst_44 {dimension_numbers = #tpu.dot_dimension_numbers<[1], [1], [0], [0], [0, 0, 1, 0], [], []>} : vector<14x16xf32>, vector<14x16xf32>, vector<14x14xf32> -> vector<14x14xf32>
    %cst_45 = arith.constant dense<0xFF800000> : vector<14xf32>
    %137 = vector.multi_reduction <maximumf>, %136, %cst_45 [0] : vector<14x14xf32> to vector<14xf32>
    %138 = vector.shape_cast %137 : vector<14xf32> to vector<1x14xf32>
    %139 = vector.broadcast %138 : vector<1x14xf32> to vector<14x14xf32>
    %140 = arith.subf %136, %139 : vector<14x14xf32>
    %141 = math.exp %140 : vector<14x14xf32>
    %cst_46 = arith.constant dense<0.000000e+00> : vector<14xf32>
    %142 = vector.multi_reduction <add>, %141, %cst_46 [0] : vector<14x14xf32> to vector<14xf32>
    %143 = vector.shape_cast %142 : vector<14xf32> to vector<1x14xf32>
    %144 = tpu.reciprocal %143 {approx = true} : vector<1x14xf32> -> vector<1x14xf32>
    %145 = vector.broadcast %144 : vector<1x14xf32> to vector<14x14xf32>
    %146 = arith.mulf %141, %145 : vector<14x14xf32>
    %cst_47 = arith.constant dense<0.000000e+00> : vector<14xf32>
    %147 = vector.multi_reduction <add>, %146, %cst_47 [1] : vector<14x14xf32> to vector<14xf32>
    %148 = vector.shape_cast %147 : vector<14xf32> to vector<14x1xf32>
    %149 = arith.addf %133, %148 : vector<14x1xf32>
    %150 = vector.extract_strided_slice %34 {offsets = [0, 112], sizes = [14, 16], strides = [1, 1]} : vector<14x128xf32> to vector<14x16xf32>
    %151 = vector.extract_strided_slice %36 {offsets = [0, 112], sizes = [14, 16], strides = [1, 1]} : vector<14x128xf32> to vector<14x16xf32>
    %cst_48 = arith.constant dense<0.000000e+00> : vector<14x14xf32>
    %152 = tpu.matmul %151, %150, %cst_48 {dimension_numbers = #tpu.dot_dimension_numbers<[1], [1], [0], [0], [0, 0, 1, 0], [], []>} : vector<14x16xf32>, vector<14x16xf32>, vector<14x14xf32> -> vector<14x14xf32>
    %cst_49 = arith.constant dense<0xFF800000> : vector<14xf32>
    %153 = vector.multi_reduction <maximumf>, %152, %cst_49 [0] : vector<14x14xf32> to vector<14xf32>
    %154 = vector.shape_cast %153 : vector<14xf32> to vector<1x14xf32>
    %155 = vector.broadcast %154 : vector<1x14xf32> to vector<14x14xf32>
    %156 = arith.subf %152, %155 : vector<14x14xf32>
    %157 = math.exp %156 : vector<14x14xf32>
    %cst_50 = arith.constant dense<0.000000e+00> : vector<14xf32>
    %158 = vector.multi_reduction <add>, %157, %cst_50 [0] : vector<14x14xf32> to vector<14xf32>
    %159 = vector.shape_cast %158 : vector<14xf32> to vector<1x14xf32>
    %160 = tpu.reciprocal %159 {approx = true} : vector<1x14xf32> -> vector<1x14xf32>
    %161 = vector.broadcast %160 : vector<1x14xf32> to vector<14x14xf32>
    %162 = arith.mulf %157, %161 : vector<14x14xf32>
    %cst_51 = arith.constant dense<0.000000e+00> : vector<14xf32>
    %163 = vector.multi_reduction <add>, %162, %cst_51 [1] : vector<14x14xf32> to vector<14xf32>
    %164 = vector.shape_cast %163 : vector<14xf32> to vector<14x1xf32>
    %165 = arith.addf %149, %164 : vector<14x1xf32>
    %cst_52 = arith.constant 1.250000e-01 : f32
    %166 = vector.broadcast %cst_52 : f32 to vector<14x1xf32>
    %167 = arith.mulf %165, %166 : vector<14x1xf32>
    %168 = vector.broadcast %167 : vector<14x1xf32> to vector<14x128xf32>
    %169 = arith.mulf %31, %168 : vector<14x128xf32>
    %170 = vector.extract_strided_slice %169 {offsets = [0, 0], sizes = [12, 128], strides = [1, 1]} : vector<14x128xf32> to vector<12x128xf32>
    %171 = vector.extract_strided_slice %169 {offsets = [1, 0], sizes = [12, 128], strides = [1, 1]} : vector<14x128xf32> to vector<12x128xf32>
    %172 = vector.extract_strided_slice %169 {offsets = [2, 0], sizes = [12, 128], strides = [1, 1]} : vector<14x128xf32> to vector<12x128xf32>
    %173 = tpu.concatenate %170, %171, %172 in 1 : vector<12x128xf32>, vector<12x128xf32>, vector<12x128xf32> -> vector<12x384xf32>
    %174 = arith.truncf %173 : vector<12x384xf32> to vector<12x384xbf16>
    %c0_53 = arith.constant 0 : index
    %c0_54 = arith.constant 0 : index
    %175 = vector.load %arg8[%c0_53, %c0_54] : memref<384x256xbf16, #tpu.memory_space<vmem>>, vector<384x256xbf16>
    %cst_55 = arith.constant dense<0.000000e+00> : vector<12x256xf32>
    %176 = tpu.matmul %174, %175, %cst_55 {dimension_numbers = #tpu.dot_dimension_numbers<[1], [0], [0], [1], [0, 0, 1, 1], [], []>} : vector<12x384xbf16>, vector<384x256xbf16>, vector<12x256xf32> -> vector<12x256xf32>
    %c0_56 = arith.constant 0 : index
    %c0_57 = arith.constant 0 : index
    %177 = vector.load %arg9[%c0_56, %c0_57] : memref<1x256xf32, #tpu.memory_space<vmem>>, vector<1x256xf32>
    %178 = vector.broadcast %177 : vector<1x256xf32> to vector<12x256xf32>
    %179 = arith.addf %176, %178 : vector<12x256xf32>
    %cst_58 = arith.constant 0.000000e+00 : f32
    %180 = vector.broadcast %cst_58 : f32 to vector<12x256xf32>
    %181 = arith.maximumf %179, %180 : vector<12x256xf32>
    %182 = vector.extract_strided_slice %181 {offsets = [0, 0], sizes = [11, 256], strides = [1, 1]} : vector<12x256xf32> to vector<11x256xf32>
    %183 = vector.extract_strided_slice %181 {offsets = [1, 0], sizes = [11, 256], strides = [1, 1]} : vector<12x256xf32> to vector<11x256xf32>
    %184 = arith.maximumf %182, %183 : vector<11x256xf32>
    %185 = vector.extract_strided_slice %184 {offsets = [0, 0], sizes = [9, 256], strides = [1, 1]} : vector<11x256xf32> to vector<9x256xf32>
    %186 = vector.extract_strided_slice %184 {offsets = [1, 0], sizes = [9, 256], strides = [1, 1]} : vector<11x256xf32> to vector<9x256xf32>
    %187 = vector.extract_strided_slice %184 {offsets = [2, 0], sizes = [9, 256], strides = [1, 1]} : vector<11x256xf32> to vector<9x256xf32>
    %188 = tpu.concatenate %185, %186, %187 in 1 : vector<9x256xf32>, vector<9x256xf32>, vector<9x256xf32> -> vector<9x768xf32>
    %189 = arith.truncf %188 : vector<9x768xf32> to vector<9x768xbf16>
    %c0_59 = arith.constant 0 : index
    %c0_60 = arith.constant 0 : index
    %190 = vector.load %arg10[%c0_59, %c0_60] : memref<768x128xbf16, #tpu.memory_space<vmem>>, vector<768x128xbf16>
    %cst_61 = arith.constant dense<0.000000e+00> : vector<9x128xf32>
    %191 = tpu.matmul %189, %190, %cst_61 {dimension_numbers = #tpu.dot_dimension_numbers<[1], [0], [0], [1], [0, 0, 1, 1], [], []>} : vector<9x768xbf16>, vector<768x128xbf16>, vector<9x128xf32> -> vector<9x128xf32>
    %c0_62 = arith.constant 0 : index
    %c0_63 = arith.constant 0 : index
    %192 = vector.load %arg11[%c0_62, %c0_63] : memref<1x128xf32, #tpu.memory_space<vmem>>, vector<1x128xf32>
    %193 = vector.broadcast %192 : vector<1x128xf32> to vector<9x128xf32>
    %194 = arith.addf %191, %193 : vector<9x128xf32>
    %cst_64 = arith.constant 0.000000e+00 : f32
    %195 = vector.broadcast %cst_64 : f32 to vector<9x128xf32>
    %196 = arith.maximumf %194, %195 : vector<9x128xf32>
    %197 = vector.extract_strided_slice %196 {offsets = [0, 0], sizes = [8, 128], strides = [1, 1]} : vector<9x128xf32> to vector<8x128xf32>
    %198 = vector.extract_strided_slice %196 {offsets = [1, 0], sizes = [8, 128], strides = [1, 1]} : vector<9x128xf32> to vector<8x128xf32>
    %199 = arith.maximumf %197, %198 : vector<8x128xf32>
    %cst_65 = arith.constant 1.250000e-01 : f32
    %200 = vector.broadcast %cst_65 : f32 to vector<1x8xf32>
    %cst_66 = arith.constant dense<0.000000e+00> : vector<1x128xf32>
    %201 = tpu.matmul %200, %199, %cst_66 {dimension_numbers = #tpu.dot_dimension_numbers<[1], [0], [0], [1], [0, 0, 1, 1], [], []>} : vector<1x8xf32>, vector<8x128xf32>, vector<1x128xf32> -> vector<1x128xf32>
    %c0_67 = arith.constant 0 : index
    %c0_68 = arith.constant 0 : index
    %202 = vector.load %arg12[%c0_67, %c0_68] : memref<128x32xf32, #tpu.memory_space<vmem>>, vector<128x32xf32>
    %cst_69 = arith.constant dense<0.000000e+00> : vector<1x32xf32>
    %203 = tpu.matmul %201, %202, %cst_69 {dimension_numbers = #tpu.dot_dimension_numbers<[1], [0], [0], [1], [0, 0, 1, 1], [], []>} : vector<1x128xf32>, vector<128x32xf32>, vector<1x32xf32> -> vector<1x32xf32>
    %c0_70 = arith.constant 0 : index
    %c0_71 = arith.constant 0 : index
    %204 = vector.load %arg13[%c0_70, %c0_71] : memref<1x32xf32, #tpu.memory_space<vmem>>, vector<1x32xf32>
    %205 = arith.addf %203, %204 : vector<1x32xf32>
    %cst_72 = arith.constant 0.000000e+00 : f32
    %206 = vector.broadcast %cst_72 : f32 to vector<1x32xf32>
    %207 = arith.maximumf %205, %206 : vector<1x32xf32>
    %c0_73 = arith.constant 0 : index
    %c0_74 = arith.constant 0 : index
    %208 = vector.load %arg14[%c0_73, %c0_74] : memref<32x3xf32, #tpu.memory_space<vmem>>, vector<32x3xf32>
    %cst_75 = arith.constant dense<0.000000e+00> : vector<1x3xf32>
    %209 = tpu.matmul %207, %208, %cst_75 {dimension_numbers = #tpu.dot_dimension_numbers<[1], [0], [0], [1], [0, 0, 1, 1], [], []>} : vector<1x32xf32>, vector<32x3xf32>, vector<1x3xf32> -> vector<1x3xf32>
    %c0_76 = arith.constant 0 : index
    %c0_77 = arith.constant 0 : index
    %210 = vector.load %arg15[%c0_76, %c0_77] : memref<1x3xf32, #tpu.memory_space<vmem>>, vector<1x3xf32>
    %211 = arith.addf %209, %210 : vector<1x3xf32>
    %c0_78 = arith.constant 0 : index
    %c0_79 = arith.constant 0 : index
    %c0_80 = arith.constant 0 : index
    %212 = vector.load %arg17[%c0_78, %c0_79, %c0_80] : memref<1x1x3xf32, #tpu.memory_space<vmem>>, vector<1x1x3xf32>
    %213 = vector.shape_cast %212 : vector<1x1x3xf32> to vector<1x3xf32>
    %214 = vector.shape_cast %211 : vector<1x3xf32> to vector<1x1x3xf32>
    tpu.vector_store %arg17[%c0_78, %c0_79, %c0_80], %214 {strides = array<i32>} : memref<1x1x3xf32, #tpu.memory_space<vmem>>, vector<1x1x3xf32>,
    %215 = arith.negf %211 : vector<1x3xf32>
    %216 = math.exp %215 : vector<1x3xf32>
    %cst_81 = arith.constant 1.000000e+00 : f32
    %217 = vector.broadcast %cst_81 : f32 to vector<1x3xf32>
    %218 = arith.addf %217, %216 : vector<1x3xf32>
    %219 = arith.divf %217, %218 : vector<1x3xf32>
    %c0_82 = arith.constant 0 : index
    %c0_83 = arith.constant 0 : index
    %c0_84 = arith.constant 0 : index
    %220 = vector.load %arg16[%c0_82, %c0_83, %c0_84] : memref<1x1x3xf32, #tpu.memory_space<vmem>>, vector<1x1x3xf32>
    %221 = vector.shape_cast %220 : vector<1x1x3xf32> to vector<1x3xf32>
    %222 = vector.shape_cast %219 : vector<1x3xf32> to vector<1x1x3xf32>
    tpu.vector_store %arg16[%c0_82, %c0_83, %c0_84], %222 {strides = array<i32>} : memref<1x1x3xf32, #tpu.memory_space<vmem>>, vector<1x1x3xf32>,
    return
  }
  func.func @transform_0(%arg0: i32) -> (i32, i32, i32) {
    %c0_i32 = arith.constant 0 : i32
    %c0_i32_0 = arith.constant 0 : i32
    %c0_i32_1 = arith.constant 0 : i32
    return %arg0, %c0_i32, %c0_i32_0 : i32, i32, i32
  }
  func.func @transform_1(%arg0: i32) -> (i32, i32) {
    %c0_i32 = arith.constant 0 : i32
    %c0_i32_0 = arith.constant 0 : i32
    %c0_i32_1 = arith.constant 0 : i32
    return %c0_i32, %c0_i32_0 : i32, i32
  }
  func.func @transform_2(%arg0: i32) -> (i32, i32) {
    %c0_i32 = arith.constant 0 : i32
    %c0_i32_0 = arith.constant 0 : i32
    %c0_i32_1 = arith.constant 0 : i32
    return %c0_i32, %c0_i32_0 : i32, i32
  }
  func.func @transform_3(%arg0: i32) -> (i32, i32) {
    %c0_i32 = arith.constant 0 : i32
    %c0_i32_0 = arith.constant 0 : i32
    %c0_i32_1 = arith.constant 0 : i32
    return %c0_i32, %c0_i32_0 : i32, i32
  }
  func.func @transform_4(%arg0: i32) -> (i32, i32) {
    %c0_i32 = arith.constant 0 : i32
    %c0_i32_0 = arith.constant 0 : i32
    %c0_i32_1 = arith.constant 0 : i32
    return %c0_i32, %c0_i32_0 : i32, i32
  }
  func.func @transform_5(%arg0: i32) -> (i32, i32) {
    %c0_i32 = arith.constant 0 : i32
    %c0_i32_0 = arith.constant 0 : i32
    %c0_i32_1 = arith.constant 0 : i32
    return %c0_i32, %c0_i32_0 : i32, i32
  }
  func.func @transform_6(%arg0: i32) -> (i32, i32) {
    %c0_i32 = arith.constant 0 : i32
    %c0_i32_0 = arith.constant 0 : i32
    %c0_i32_1 = arith.constant 0 : i32
    return %c0_i32, %c0_i32_0 : i32, i32
  }
  func.func @transform_7(%arg0: i32) -> (i32, i32) {
    %c0_i32 = arith.constant 0 : i32
    %c0_i32_0 = arith.constant 0 : i32
    %c0_i32_1 = arith.constant 0 : i32
    return %c0_i32, %c0_i32_0 : i32, i32
  }
  func.func @transform_8(%arg0: i32) -> (i32, i32) {
    %c0_i32 = arith.constant 0 : i32
    %c0_i32_0 = arith.constant 0 : i32
    %c0_i32_1 = arith.constant 0 : i32
    return %c0_i32, %c0_i32_0 : i32, i32
  }
  func.func @transform_9(%arg0: i32) -> (i32, i32) {
    %c0_i32 = arith.constant 0 : i32
    %c0_i32_0 = arith.constant 0 : i32
    %c0_i32_1 = arith.constant 0 : i32
    return %c0_i32, %c0_i32_0 : i32, i32
  }
  func.func @transform_10(%arg0: i32) -> (i32, i32) {
    %c0_i32 = arith.constant 0 : i32
    %c0_i32_0 = arith.constant 0 : i32
    %c0_i32_1 = arith.constant 0 : i32
    return %c0_i32, %c0_i32_0 : i32, i32
  }
  func.func @transform_11(%arg0: i32) -> (i32, i32) {
    %c0_i32 = arith.constant 0 : i32
    %c0_i32_0 = arith.constant 0 : i32
    %c0_i32_1 = arith.constant 0 : i32
    return %c0_i32, %c0_i32_0 : i32, i32
  }
  func.func @transform_12(%arg0: i32) -> (i32, i32) {
    %c0_i32 = arith.constant 0 : i32
    %c0_i32_0 = arith.constant 0 : i32
    %c0_i32_1 = arith.constant 0 : i32
    return %c0_i32, %c0_i32_0 : i32, i32
  }
  func.func @transform_13(%arg0: i32) -> (i32, i32) {
    %c0_i32 = arith.constant 0 : i32
    %c0_i32_0 = arith.constant 0 : i32
    %c0_i32_1 = arith.constant 0 : i32
    return %c0_i32, %c0_i32_0 : i32, i32
  }
  func.func @transform_14(%arg0: i32) -> (i32, i32) {
    %c0_i32 = arith.constant 0 : i32
    %c0_i32_0 = arith.constant 0 : i32
    %c0_i32_1 = arith.constant 0 : i32
    return %c0_i32, %c0_i32_0 : i32, i32
  }
  func.func @transform_15(%arg0: i32) -> (i32, i32, i32) {
    %c0_i32 = arith.constant 0 : i32
    %c0_i32_0 = arith.constant 0 : i32
    %c0_i32_1 = arith.constant 0 : i32
    return %arg0, %c0_i32, %c0_i32_0 : i32, i32, i32
  }
  func.func @transform_16(%arg0: i32) -> (i32, i32, i32) {
    %c0_i32 = arith.constant 0 : i32
    %c0_i32_0 = arith.constant 0 : i32
    %c0_i32_1 = arith.constant 0 : i32
    return %arg0, %c0_i32, %c0_i32_0 : i32, i32, i32
  }
}

</mosaic_0001>

<bundles_post_ra>
// kernel: cnn_attn_forward.1
= control target key start
LH: loop header
LB: loop body
LE: loop exit
PB: predicated region body
PF: predicated region fallthrough
CT: control target
= control target key end

     0   :  { %s5348_s0 = inlined_call_operand.vmem [shape: f32[2,20,4], index: 0, kind: input, shape index: {}]   ;;  %s5349_s1 = inlined_call_operand.vmem [shape: bf16[12,64], index: 1, kind: input, shape index: {}]   ;;  %s5350_s2 = inlined_call_operand.vmem [shape: f32[1,64], index: 2, kind: input, shape index: {}]   ;;  %s5351_s3 = inlined_call_operand.vmem [shape: bf16[192,128], index: 3, kind: input, shape index: {}]   ;;  %s5352_s4 = inlined_call_operand.vmem [shape: f32[1,128], index: 4, kind: input, shape index: {}]   ;;  %s5353_s5 = inlined_call_operand.vmem [shape: bf16[128,128], index: 5, kind: input, shape index: {}]   ;;  %s5354_s6 = inlined_call_operand.vmem [shape: bf16[128,128], index: 6, kind: input, shape index: {}]   ;;  %s5355_s7 = inlined_call_operand.vmem [shape: bf16[384,256], index: 7, kind: input, shape index: {}]   ;;  %s5356_s8 = inlined_call_operand.vmem [shape: f32[1,256], index: 8, kind: input, shape index: {}]   ;;  %s5357_s9 = inlined_call_operand.vmem [shape: bf16[768,128], index: 9, kind: input, shape index: {}]   ;;  %s5358_s10 = inlined_call_operand.vmem [shape: f32[1,128], index: 10, kind: input, shape index: {}]   ;;  %s5359_s11 = inlined_call_operand.vmem [shape: f32[128,32], index: 11, kind: input, shape index: {}]   ;;  %s5360_s12 = inlined_call_operand.vmem [shape: f32[1,32], index: 12, kind: input, shape index: {}]   ;;  %s5361_s13 = inlined_call_operand.vmem [shape: f32[32,3], index: 13, kind: input, shape index: {}]   ;;  %s5362_s14 = inlined_call_operand.vmem [shape: f32[1,3], index: 14, kind: input, shape index: {}]   ;;  %s5363_s15 = inlined_call_operand.hbm [shape: f32[2,1,3], index: 15, kind: output, shape index: {0}]   ;;  %s5364_s16 = inlined_call_operand.hbm [shape: f32[2,1,3], index: 16, kind: output, shape index: {1}]  }
   0x1   :  { %5367 = sst [smem:[#allocation10_spill]] %s5348_s0 }
   0x2   :  { %5368 = sst [smem:[#allocation11_spill]] %s5349_s1 }
   0x3   :  { %5369 = sst [smem:[#allocation12_spill]] %s5350_s2 }
   0x4   :  { %5370 = sst [smem:[#allocation13_spill]] %s5351_s3 }
   0x5   :  { %5371 = sst [smem:[#allocation14_spill]] %s5352_s4 }
   0x6   :  { %22 = vsyncpa [#allocation3], 0 }
   0x7   :  { %24 = vsyncpa [#allocation3 + $0x1], 0 }
   0x8   :  { %25 = vsyncpa [#allocation5], 0 }
   0x9   :  { %27 = vsyncpa [#allocation5 + $0x1], 0  ;;  %s4472_s21 = smov 0   ;;  %s4474_s22 = smov 0  }
   0xa   :  { %s4476_s23 = smov 0   ;;  %s4478_s24 = smov 0  }
   0xb LB: > { %5372 = sst [smem:[#allocation8_spill]] %s4365_s23  ;;  %s4493_s25 = sadd.s32 4294967295, %s4369_s24   ;;  %s4369_s24 = sphi %s4478_s24, %s5388_s24   ;;  %s4365_s23 = sphi %s4476_s23, %s5385_s23   ;;  %s4361_s22 = sphi %s4474_s22, %s5387_s22   ;;  %s4357_s21 = sphi %s4472_s21, %s5386_s21  }
   0xc   : > { %s3407_s26 = sadd.s32 4294967294, %s4369_s24   ;;  %s4497_s27 = sadd.s32 1, %s4369_s24  }
   0xd   : > { %s360_s28 = sadd.s32 1, %s4365_s23  ;;  %s357_s29 = ssub.s32 %s4369_s24, %s4497_s27 }
   0xe   : > { %p370_p0 = scmp.ne.s32.totalorder %s4365_s23, %s4361_s22  ;;  %p358_p1 = scmp.eq.s32.totalorder %s357_s29, 0 }
   0xf   : > { %p371_p2 = scmp.eq.s32.totalorder %s4493_s25, 1  ;;  %p376_p3 = scmp.ne.s32.totalorder %s4361_s22, %s4357_s21 }
  0x10   : > { %p377_p4 = scmp.eq.s32.totalorder %s3407_s26, 1  ;;  %p3410_p7 = scmp.ge.s32.totalorder %s4369_s24, 1 }
  0x11   : > { %s4508_s30 = scalar_select %p358_p1, %s4365_s23, %s360_s28  }
  0x12   : > { %p4510_p5 = por %p371_p2, %p370_p0  ;;  %p4514_p6 = por %p377_p4, %p376_p3 }
  0x13   : > { %5373 = sst [smem:[#allocation9_spill]] %s4508_s30  ;;  %p471_p8 = scmp.lt.s32.totalorder %s4369_s24, 3 }
  0x15   : > { %p472_p9 = pnand %p3410_p7, %p471_p8 }
  0x16   : > { %p524_p10 = scmp.lt.s32.totalorder (!%p472_p9), %s4493_s25, 1  ;;  %vm551_vm0 = vcmask (!%p472_p9), 1045504   ;;  %s5376_s1 = sld [smem:[#allocation11_spill]] (!%p472_p9)  ;;  %vm536_vm1 = vcmask (!%p472_p9), 1046528   ;;  %vm566_vm2 = vcmask (!%p472_p9), 31744   ;;  %vm570_vm3 = vcmask (!%p472_p9), 64512  }
  0x17   : > { %475 = sbr.rel (%p472_p9) target bundleno = 2816 (0xb00), region = 80  ;;  %s5377_s30 = sld [smem:[#allocation10_spill]] (!%p472_p9)  ;;  %vm590_vm4 = vcmask (!%p472_p9), 97280   ;;  %v4373_v34 = vmov (!%p472_p9), 0   ;;  %v4087_v63 = vld [vmem:[%s5353_s5] sm:$0xff] (!%p472_p9)   ;;  %vm684_vm5 = vcmask (!%p472_p9), 523264  }
  0x18   : > { %s5378_s3 = sld [smem:[#allocation13_spill]] (!%p472_p9)  ;;  %795 = vmatprep.subr.bf16.mxu1 (!%p472_p9), %v4373_v34  ;;  %s5379_s2 = sld [smem:[#allocation12_spill]] (!%p472_p9)  ;;  %vm4376_vm6 = vmmov (!%p472_p9), 0   ;;  %vm1058_vm7 = vcmask (!%p472_p9), 130048   ;;  %vm1148_vm9 = vcmask (!%p472_p9), 111616   ;;  %vm1146_vm10 = vcmask (!%p472_p9), 113664  }
  0x19   : > { %s5380_s4 = sld [smem:[#allocation14_spill]] (!%p472_p9)  ;;  %vm4677_vm8 = vmpackc.low (!%p472_p9), %vm1058_vm7, %vm1058_vm7  ;;  %s4377_s19 = smov (!%p472_p9), 96   ;;  %vm3211_vm11 = vcmask (!%p472_p9), 261120   ;;  %vm3285_vm12 = vcmask (!%p472_p9), 16384  }
  0x1a   : > { %s4378_s20 = smov (!%p472_p9), 112   ;;  %s4380_s28 = smov (!%p472_p9), 48  }
  0x1b   : > { %s4381_s29 = smov (!%p472_p9), 32  }
  0x1c   : > { %v4074_v0 = vld [vmem:[%s5376_s1] sm:$0x3f] (!%p472_p9)   ;;  %s4385_s1 = smov (!%p472_p9), [#allocation4]  }
  0x1d   : > { %3964 = vmatprep.subr.msk.bf16.mxu0 (!%p472_p9), %vm551_vm0, %v4074_v0  ;;  %v598_v1 = vsel (!%p472_p9), %vm551_vm0, %v4074_v0, 0 }
  0x1e   : > { %s525_s18 = scalar_select %p524_p10, %s4493_s25, 1  ;;  %3726 = vmatpush3.bf16.msra.mxu0 %v598_v1  ;;  %v4075_v33 = vld [vmem:[%s5378_s3] sm:$0xff]   ;;  %v4076_v35 = vld [vmem:[%s5378_s3 + $0x8] sm:$0xff]   ;;  %v4077_v36 = vld [vmem:[%s5378_s3 + $0x10] sm:$0xff]  }
  0x1f   : > { %796 = vmatpush1.bf16.msra.mxu1 %v4075_v33  ;;  %v4078_v37 = vld [vmem:[%s5378_s3 + $0x18] sm:$0xff]   ;;  %v4079_v38 = vld [vmem:[%s5378_s3 + $0x20] sm:$0xff]   ;;  %v4080_v39 = vld [vmem:[%s5378_s3 + $0x28] sm:$0xff]  }
  0x20   : > { %s3965_s26 = smul.u32 24, %s525_s18  ;;  %s4372_s18 = smov 8   ;;  %797 = vmatprep.subr.bf16.mxu1 %v4373_v34  ;;  %v4081_v40 = vld [vmem:[%s5378_s3 + $0x30] sm:$0xff]   ;;  %v4082_v41 = vld [vmem:[%s5378_s3 + $0x38] sm:$0xff]   ;;  %v4083_v42 = vld [vmem:[%s5378_s3 + $0x40] sm:$0xff]  }
  0x21   : > { %v4084_v43 = vld [vmem:[%s5378_s3 + $0x48] sm:$0xff]   ;;  %v4085_v44 = vld [vmem:[%s5378_s3 + $0x50] sm:$0xff]   ;;  %v3412_v45 = vld [vmem:[%s5379_s2] ss:$0 sm:$0xff]  ;;  %s5366_s2 = sshll.u32 %s4493_s25, 4 }
  0x22   : > { %s528_s23 = scalar_lea.vmem %s5377_s30, %s3965_s26  ;;  %s4371_s30 = smov 4   ;;  %v4086_v56 = vld [vmem:[%s5378_s3 + $0x58] sm:$0xff]  }
  0x23   : > { %v530_v2 = vld [vmem:[%s528_s23] sm:$0xff]  ;;  %v531_v3 = vld [vmem:[%s528_s23 + $0x8] sm:$0xff]  ;;  %v532_v4 = vld [vmem:[%s528_s23 + $0x10] sm:$0xf]  ;;  %798 = vmatpush1.bf16.msra.mxu1 %v4076_v35  ;;  %s4375_s23 = smov 64   ;;  %s4379_s26 = smov 80  }
  0x24   : > { %v537_v5 = vrot.slane %v530_v2, 1  ;;  %v538_v6 = vrot.slane %v531_v3, 1  ;;  %v540_v7 = vrot.slane %v532_v4, 1  ;;  %v552_v8 = vrot.slane %v530_v2, 2  ;;  %799 = vmatprep.subr.bf16.mxu1 %v4373_v34  ;;  %s4279_s3 = sshll.u32 %s4385_s1, 4  ;;  %s4280_s3 = int_to_ptr.vmem [resolvable:$false] %s4279_s3 }
  0x25   : > { %v553_v9 = vrot.slane %v531_v3, 2  ;;  %v555_v10 = vrot.slane %v532_v4, 2 }
  0x26   : > { %v539_v11 = vsel %vm536_vm1, %v537_v5, %v538_v6  ;;  %v541_v12 = vsel %vm536_vm1, %v538_v6, %v540_v7 }
  0x27   : > { %v4024_v13 = vpack.i.bf16 %v541_v12, %v539_v11  ;;  %v554_v14 = vsel %vm551_vm0, %v552_v8, %v553_v9  ;;  %v556_v15 = vsel %vm551_vm0, %v553_v9, %v555_v10  ;;  %800 = vmatpush1.bf16.msra.mxu1 %v4077_v36 }
  0x28   : > { %v4029_v16 = vpack.i.bf16 %v556_v15, %v554_v14  ;;  %801 = vmatprep.subr.bf16.mxu1 %v4373_v34  ;;  %v4089_v14 = vld [vmem:[%s5353_s5 + $0x10] sm:$0xff]   ;;  %v4090_v15 = vld [vmem:[%s5353_s5 + $0x18] sm:$0xff]  }
  0x29   : > { %4025 = vrot.lane.b32.xlu0 %v4024_v13, %s4371_s30 }
  0x2a   : > { %4030 = vrot.lane.b32.xlu1 %v4029_v16, %s4372_s18  ;;  %v4091_v16 = vld [vmem:[%s5353_s5 + $0x20] sm:$0xff]  }
  0x2b   : > { %802 = vmatpush1.bf16.msra.mxu1 %v4078_v37 }
  0x2c   : > { %803 = vmatprep.subr.bf16.mxu1 %v4373_v34 }
  0x2d   : > { %546 = vrot.lane.b32.xlu0 %v540_v7, %s4371_s30  ;;  %s4382_s30 = smov 16  }
  0x2e   : > { %561 = vrot.lane.b32.xlu1 %v555_v10, %s4372_s18 }
  0x2f   : > { %804 = vmatpush1.bf16.msra.mxu1 %v4079_v38 }
  0x30   : > { %805 = vmatprep.subr.bf16.mxu1 %v4373_v34 }
  0x33   : > { %806 = vmatpush1.bf16.msra.mxu1 %v4080_v39 }
  0x34   : > { %807 = vmatprep.subr.bf16.mxu1 %v4373_v34 }
  0x37   : > { %808 = vmatpush1.bf16.msra.mxu1 %v4081_v40 }
  0x38   : > { %809 = vmatprep.subr.bf16.mxu1 %v4373_v34 }
  0x3b   : > { %810 = vmatpush1.bf16.msra.mxu1 %v4082_v41  ;;  %v4095_v41 = vld [vmem:[%s5354_s6] sm:$0xff]  }
  0x3c   : > { %811 = vmatprep.subr.bf16.mxu1 %v4373_v34 }
  0x3f   : > { %812 = vmatpush1.bf16.msra.mxu1 %v4083_v42 }
  0x40   : > { %813 = vmatprep.subr.bf16.mxu1 %v4373_v34 }
  0x43   : > { %814 = vmatpush1.bf16.msra.mxu1 %v4084_v43  ;;  %v4096_v43 = vld [vmem:[%s5354_s6 + $0x8] sm:$0xff]  }
  0x44   : > { %815 = vmatprep.subr.bf16.mxu1 %v4373_v34 }
  0x47   : > { %816 = vmatpush1.bf16.msra.mxu1 %v4085_v44  ;;  %v4097_v44 = vld [vmem:[%s5354_s6 + $0x10] sm:$0xff]  }
  0x48   : > { %817 = vmatprep.subr.bf16.mxu1 %v4373_v34 }
  0x4b   : > { %818 = vmatpush1.bf16.msra.mxu1 %v4086_v56 }
  0x9b   : > { %v4026_v17 = vpop.permute.xlu0 %4025 }
  0x9c   : > { %v4028_v18 = vunpack.i.h.bf16 %v4026_v17  ;;  %v4027_v19 = vunpack.i.l.bf16 %v4026_v17  ;;  %v4031_v20 = vpop.permute.xlu1 %4030 }
  0x9d   : > { %v4033_v21 = vunpack.i.h.bf16 %v4031_v20  ;;  %v4032_v22 = vunpack.i.l.bf16 %v4031_v20 }
  0x9e   : > { %v567_v23 = vsel %vm566_vm2, %v530_v2, %v4027_v19  ;;  %v568_v24 = vsel %vm566_vm2, %v531_v3, %v4028_v18  ;;  %v4374_v2 = vmov 0.0  }
  0x9f   : > { %v547_v25 = vpop.permute.xlu0 %546  ;;  %v571_v26 = vsel %vm570_vm3, %v567_v23, %v4032_v22  ;;  %v572_v27 = vsel %vm570_vm3, %v568_v24, %v4033_v21  ;;  %3731 = vmatprep.subr.bf16.mxu0 %v4374_v2  ;;  %v4092_v23 = vld [vmem:[%s5353_s5 + $0x28] sm:$0xff]   ;;  %v4093_v24 = vld [vmem:[%s5353_s5 + $0x30] sm:$0xff]  }
  0xa0   : > { %v569_v28 = vsel %vm566_vm2, %v532_v4, %v547_v25  ;;  %v562_v29 = vpop.permute.xlu1 %561  ;;  %v574_v30 = vpack.c.bf16 %v572_v27, %v571_v26  ;;  %v4088_v4 = vld [vmem:[%s5353_s5 + $0x8] sm:$0xff]   ;;  %v4094_v25 = vld [vmem:[%s5353_s5 + $0x38] sm:$0xff]   ;;  %v3416_v26 = vld [vmem:[%s5380_s4] ss:$0 sm:$0xff] }
  0xa1   : > { %v573_v31 = vsel %vm570_vm3, %v569_v28, %v562_v29 }
  0xa2   : > { %v575_v32 = vpack.c.bf16 %v573_v31, %v573_v31  ;;  %3727 = vmatprep.mubr.msk.bf16.mxu0 %vm590_vm4, %v574_v30 }
  0xa4   : > { %3728 = vmatmul.mubr.msk.bf16.vlgmr.msra.gmra.mrb[0].mxu0 %vm590_vm4, %v575_v32 }
  0xa5   : > { %3732 = vmatpush3.bf16.msra.mxu0 %v4087_v63  ;;  %3747 = vmatprep.mubr.msk.bf16.mxu0 %vm4376_vm6, %v4374_v2 }
  0xa6   : > { %3733 = vmatprep.subr.bf16.mxu0 %v4374_v2 }
  0xa9   : > { %3734 = vmatpush3.bf16.msra.mxu0 %v4088_v4 }
  0xaa   : > { %3735 = vmatprep.subr.bf16.mxu0 %v4374_v2 }
  0xad   : > { %3736 = vmatpush3.bf16.msra.mxu0 %v4089_v14 }
  0xae   : > { %3737 = vmatprep.subr.bf16.mxu0 %v4374_v2 }
  0xb1   : > { %3738 = vmatpush3.bf16.msra.mxu0 %v4090_v15 }
  0xb2   : > { %3739 = vmatprep.subr.bf16.mxu0 %v4374_v2 }
  0xb5   : > { %3740 = vmatpush3.bf16.msra.mxu0 %v4091_v16 }
  0xb6   : > { %3741 = vmatprep.subr.bf16.mxu0 %v4374_v2 }
  0xb9   : > { %3742 = vmatpush3.bf16.msra.mxu0 %v4092_v23 }
  0xba   : > { %3743 = vmatprep.subr.bf16.mxu0 %v4374_v2 }
  0xbd   : > { %3744 = vmatpush3.bf16.msra.mxu0 %v4093_v24 }
  0xbe   : > { %3745 = vmatprep.subr.bf16.mxu0 %v4374_v2 }
  0xc1   : > { %3746 = vmatpush3.bf16.msra.mxu0 %v4094_v25 }
  0xc2   : > { %3751 = vmatprep.subr.bf16.mxu0 %v4374_v2 }
 0x177   : > { %v3729_v46 = vpop.f32.mrb[0].mxu0 }
 0x178   : > { %v643_v47 = vadd.f32 %v3729_v46, %v3412_v45  ;;  %v634_v48 = vpop.f32.mrb[1].mxu0  ;;  %v4099_v46 = vld [vmem:[%s5354_s6 + $0x20] sm:$0xff]  }
 0x179   : > { %v635_v49 = vadd.f32 %v3412_v45, %v634_v48  ;;  %v3730_v50 = vpop.f32.mrb[2].mxu0  ;;  %v4101_v48 = vld [vmem:[%s5354_s6 + $0x30] sm:$0xff]  }
 0x17a   : > { %v650_v51 = vmax.f32 %v643_v47, 0.0  ;;  %v637_v52 = vpop.f32.mrb[3].mxu0  ;;  %v4100_v47 = vld [vmem:[%s5354_s6 + $0x28] sm:$0xff]  }
 0x17b   : > { %v648_v53 = vmax.f32 %v635_v49, 0.0  ;;  %v638_v54 = vadd.f32 %v3412_v45, %v637_v52  ;;  %v4098_v45 = vld [vmem:[%s5354_s6 + $0x18] sm:$0xff]  }
 0x17c   : > { %v657_v55 = vrot.slane %v650_v51, 1  ;;  %v4102_v49 = vld [vmem:[%s5354_s6 + $0x38] sm:$0xff]  }
 0x17d   : > { %v649_v57 = vmax.f32 %v638_v54, 0.0  ;;  %v654_v59 = vrot.slane %v648_v53, 1 }
 0x17e   : > { %v664_v58 = vmax.f32 %v650_v51, %v657_v55 }
 0x17f   : > { %v655_v60 = vrot.slane %v649_v57, 1 }
 0x180   : > { %v680_v3 = vrot.slane %v664_v58, 2 }
 0x181   : > { %v656_v61 = vsel %vm536_vm1, %v654_v59, %v655_v60  ;;  %v658_v62 = vsel %vm536_vm1, %v655_v60, %v657_v55 }
 0x182   : > { %v662_v0 = vmax.f32 %v648_v53, %v656_v61  ;;  %v663_v1 = vmax.f32 %v649_v57, %v658_v62 }
 0x184   : > { %v677_v5 = vrot.slane %v662_v0, 2  ;;  %v678_v6 = vrot.slane %v663_v1, 2  ;;  %v667_v7 = vrot.slane %v662_v0, 1  ;;  %v668_v8 = vrot.slane %v663_v1, 1 }
 0x186   : > { %v679_v9 = vsel %vm551_vm0, %v677_v5, %v678_v6  ;;  %v681_v10 = vsel %vm551_vm0, %v678_v6, %v680_v3  ;;  %v669_v11 = vsel %vm536_vm1, %v667_v7, %v668_v8 }
 0x187   : > { %v688_v12 = vpack.c.bf16 %v681_v10, %v679_v9  ;;  %v4034_v13 = vpack.i.bf16 %v668_v8, %v669_v11 }
 0x189   : > { %3429 = vmatprep.mubr.msk.bf16.mxu1 %vm684_vm5, %v688_v12  ;;  %4035 = vrot.lane.b32.xlu0 %v4034_v13, %s4375_s23 }
 0x1fb   : > { %v4036_v17 = vpop.permute.xlu0 %4035 }
 0x1fc   : > { %v4038_v18 = vunpack.i.h.bf16 %v4036_v17  ;;  %v4037_v19 = vunpack.i.l.bf16 %v4036_v17 }
 0x1fe   : > { %v685_v20 = vsel %vm684_vm5, %v662_v0, %v4037_v19  ;;  %v686_v21 = vsel %vm684_vm5, %v663_v1, %v4038_v18 }
 0x1ff   : > { %v687_v22 = vpack.c.bf16 %v686_v21, %v685_v20 }
 0x201   : > { %828 = vmatmul.mubr.bf16.vlgmr.msra.gmra.mrb[0].mxu1 %v687_v22 }
 0x2d4   : > { %v829_v27 = vpop.f32.mrb[0].mxu1 }
 0x2d5   : > { %v830_v28 = vadd.f32 %v3416_v26, %v829_v27  ;;  %v831_v29 = vpop.f32.mrb[1].mxu1 }
 0x2d6   : > { %v832_v30 = vpop.f32.mrb[2].mxu1 }
 0x2d7   : > { %v836_v31 = vmax.f32 %v830_v28, 0.0  ;;  %v833_v32 = vadd.f32 %v3416_v26, %v832_v30  ;;  %v834_v33 = vpop.f32.mrb[3].mxu1 }
 0x2d9   : > { %v837_v35 = vmax.f32 %v833_v32, 0.0  ;;  %v840_v36 = vrot.slane %v836_v31, 1 }
 0x2db   : > { %v841_v37 = vrot.slane %v837_v35, 1 }
 0x2dd   : > { %v842_v38 = vsel %vm536_vm1, %v840_v36, %v841_v37  ;;  %v4636_v39 = vmax.f32 %v837_v35, %v841_v37 }
 0x2de   : > { %v4638_v40 = vmax.f32 %v836_v31, %v842_v38 }
 0x2e0   : > { %v847_v42 = vpack.c.bf16 %v4636_v39, %v4638_v40 }
 0x2e2   : > { %3748 = vmatmul.mubr.bf16.vlgmr.msra.gmra.mrb[4].mxu0 %v847_v42 }
 0x2e3   : > { %3752 = vmatpush3.bf16.msra.mxu0 %v4095_v41  ;;  %3767 = vmatprep.mubr.msk.bf16.mxu0 %vm4376_vm6, %v4374_v2 }
 0x2e4   : > { %3753 = vmatprep.subr.bf16.mxu0 %v4374_v2 }
 0x2e7   : > { %3754 = vmatpush3.bf16.msra.mxu0 %v4096_v43 }
 0x2e8   : > { %3755 = vmatprep.subr.bf16.mxu0 %v4374_v2 }
 0x2eb   : > { %3756 = vmatpush3.bf16.msra.mxu0 %v4097_v44 }
 0x2ec   : > { %3757 = vmatprep.subr.bf16.mxu0 %v4374_v2 }
 0x2ef   : > { %3758 = vmatpush3.bf16.msra.mxu0 %v4098_v45 }
 0x2f0   : > { %3759 = vmatprep.subr.bf16.mxu0 %v4374_v2 }
 0x2f3   : > { %3760 = vmatpush3.bf16.msra.mxu0 %v4099_v46 }
 0x2f4   : > { %3761 = vmatprep.subr.bf16.mxu0 %v4374_v2 }
 0x2f7   : > { %3762 = vmatpush3.bf16.msra.mxu0 %v4100_v47 }
 0x2f8   : > { %3763 = vmatprep.subr.bf16.mxu0 %v4374_v2 }
 0x2fb   : > { %3764 = vmatpush3.bf16.msra.mxu0 %v4101_v48 }
 0x2fc   : > { %3765 = vmatprep.subr.bf16.mxu0 %v4374_v2 }
 0x2ff   : > { %3766 = vmatpush3.bf16.msra.mxu0 %v4102_v49 }
 0x302   : > { %3768 = vmatmul.mubr.bf16.vlgmr.msra.gmra.mrb[8].mxu0 %v847_v42 }
 0x3b5   : > { %v946_v50 = vpop.f32.mrb[4].mxu0 }
 0x3b6   : > { %v3749_v51 = vpop.f32.mrb[5].mxu0 }
 0x3b7   : > { %v949_v52 = vpop.f32.mrb[6].mxu0 }
 0x3b8   : > { %v3750_v53 = vpop.f32.mrb[7].mxu0  ;;  %v4044_v54 = vpack.i.bf16 %v949_v52, %v946_v50  ;;  %v3878_v55 = vpack.c.bf16 %v949_v52, %v946_v50 }
 0x3ba   : > { %4045 = vrot.lane.b32.xlu0 %v4044_v54, %s4377_s19  ;;  %4040 = vrot.lane.b32.xlu1 %v4044_v54, %s4378_s20 }
 0x3bb   : > { %3880 = vmatprep.subr.msk.bf16.mxu1 %vm4677_vm8, %v3878_v55 }
 0x3bc   : > { %3883 = vmatpush3.bf16.xpose.msk.msra.mxu1 %vm4677_vm8, %v3878_v55 }
 0x3d5   : > { %v1051_v57 = vpop.f32.mrb[8].mxu0 }
 0x3d6   : > { %1183 = vrot.lane.b32.xlu1 %v1051_v57, %s4378_s20  ;;  %v3769_v58 = vpop.f32.mrb[9].mxu0  ;;  %3775 = vmatprep.mubr.msk.f32.mxu1 %vm1058_vm7, %v1051_v57 }
 0x3d7   : > { %v1054_v59 = vpop.f32.mrb[10].mxu0 }
 0x3d8   : > { %1185 = vrot.lane.b32.xlu0 %v1054_v59, %s4378_s20  ;;  %v3770_v60 = vpop.f32.mrb[11].mxu0  ;;  %3776 = vmatmul.mubr.msk.f32.vlgmr.msra.gmra.mrb[4].mxu1 %vm1058_vm7, %v1054_v59 }
 0x3da   : > { %4050 = vrot.lane.b32.xlu1 %v4044_v54, %s4379_s26 }
 0x3dc   : > { %1309 = vrot.lane.b32.xlu0 %v1051_v57, %s4377_s19 }
 0x3de   : > { %1311 = vrot.lane.b32.xlu1 %v1054_v59, %s4377_s19 }
 0x3e0   : > { %4055 = vrot.lane.b32.xlu0 %v4044_v54, %s4375_s23 }
 0x3e2   : > { %1435 = vrot.lane.b32.xlu1 %v1051_v57, %s4379_s26 }
 0x3e4   : > { %4060 = vrot.lane.b32.xlu0 %v4044_v54, %s4380_s28 }
 0x3e6   : > { %1437 = vrot.lane.b32.xlu1 %v1054_v59, %s4379_s26  ;;  %s4281_s26 = scalar_lea.vmem %s4280_s3, 32 }
 0x3e8   : > { %4065 = vrot.lane.b32.xlu0 %v4044_v54, %s4381_s29 }
 0x3ea   : > { %1561 = vrot.lane.b32.xlu1 %v1051_v57, %s4375_s23 }
 0x3ec   : > { %4070 = vrot.lane.b32.xlu0 %v4044_v54, %s4382_s30 }
 0x3ee   : > { %1563 = vrot.lane.b32.xlu1 %v1054_v59, %s4375_s23  ;;  %s5259_s23 = sand.u32 1, %s4361_s22  }
 0x3ef   : > { %s523_s19 = scalar_lea.vmem [#allocation4], %s5259_s23 }
 0x3f0   : > { %1687 = vrot.lane.b32.xlu0 %v1051_v57, %s4380_s28  ;;  %s3324_s20 = sshll.u32 %s523_s19, 4  ;;  %s5273_s20 = int_to_ptr.vmem [resolvable:$true] %s3324_s20 }
 0x3f1   : > { %s4275_s18 = scalar_lea.vmem %s5273_s20, 16  ;;  %p4282_p0 = scmp.lt.s32.totalorder %s5273_s20, %s4280_s3 }
 0x3f2   : > { %1689 = vrot.lane.b32.xlu1 %v1054_v59, %s4380_s28  ;;  %p4276_p11 = scmp.ne.s32.totalorder %s5273_s20, %s4275_s18  ;;  %p4283_p1 = scmp.lt.s32.totalorder %s4281_s26, %s4275_s18 }
 0x3f4   : > { %1813 = vrot.lane.b32.xlu0 %v1051_v57, %s4381_s29  ;;  %p4277_p12 = pnand %p4276_p11, %p4510_p5  ;;  %p4284_p2 = por %p4283_p1, %p4282_p0 }
 0x3f6   : > { %1815 = vrot.lane.b32.xlu1 %v1054_v59, %s4381_s29  ;;  %s5271_s29 = scalar_lea.hbm %s5364_s16, %s5366_s2  ;;  %p4278_p13 = pneg %p4277_p12 }
 0x3f8   : > { %1939 = vrot.lane.b32.xlu0 %v1051_v57, %s4382_s30  ;;  %p4285_p3 = pnand %p4284_p2, %p4278_p13 }
 0x3fa   : > { %1941 = vrot.lane.b32.xlu1 %v1054_v59, %s4382_s30  ;;  %s3299_s30 = scalar_lea.sflag [#allocation5], %s5259_s23 }
 0x42c   : > { %v4046_v61 = vpop.permute.xlu0 %4045  ;;  %v4041_v62 = vpop.permute.xlu1 %4040 }
 0x42d   : > { %v4048_v63 = vunpack.i.h.bf16 %v4046_v61  ;;  %v4047_v0 = vunpack.i.l.bf16 %v4046_v61  ;;  %v4043_v1 = vunpack.i.h.bf16 %v4041_v62  ;;  %v4042_v3 = vunpack.i.l.bf16 %v4041_v62 }
 0x42f   : > { %v3884_v4 = vpack.c.bf16 %v4043_v1, %v4042_v3  ;;  %v3890_v5 = vpack.c.bf16 %v4048_v63, %v4047_v0 }
 0x431   : > { %3886 = vmatprep.subr.msk.bf16.mxu1 %vm4677_vm8, %v3884_v4 }
 0x432   : > { %3889 = vmatpush3.bf16.xpose.msk.msra.mxu1 %vm4677_vm8, %v3884_v4 }
 0x433   : > { %3892 = vmatprep.subr.msk.bf16.mxu1 %vm4677_vm8, %v3890_v5 }
 0x448   : > { %v1184_v6 = vpop.permute.xlu1 %1183 }
 0x449   : > { %3782 = vmatprep.mubr.msk.f32.mxu1 %vm1058_vm7, %v1184_v6 }
 0x44a   : > { %v1186_v7 = vpop.permute.xlu0 %1185 }
 0x44b   : > { %3783 = vmatmul.mubr.msk.f32.vlgmr.msra.gmra.mrb[6].mxu1 %vm1058_vm7, %v1186_v7 }
 0x44c   : > { %3895 = vmatpush3.bf16.xpose.msk.msra.mxu1 %vm4677_vm8, %v3890_v5  ;;  %v4051_v8 = vpop.permute.xlu1 %4050 }
 0x44d   : > { %v4053_v9 = vunpack.i.h.bf16 %v4051_v8  ;;  %v4052_v10 = vunpack.i.l.bf16 %v4051_v8 }
 0x44e   : > { %v1310_v11 = vpop.permute.xlu0 %1309 }
 0x44f   : > { %v3896_v12 = vpack.c.bf16 %v4053_v9, %v4052_v10  ;;  %3789 = vmatprep.mubr.msk.f32.mxu1 %vm1058_vm7, %v1310_v11  ;;  %v4103_v11 = vld [vmem:[%s5355_s7] ss:$8 sps:$4 sm:$0xff]  }
 0x450   : > { %v1312_v13 = vpop.permute.xlu1 %1311 }
 0x451   : > { %3898 = vmatprep.subr.msk.bf16.mxu1 %vm4677_vm8, %v3896_v12 }
 0x452   : > { %v4056_v14 = vpop.permute.xlu0 %4055 }
 0x453   : > { %v4058_v15 = vunpack.i.h.bf16 %v4056_v14  ;;  %v4057_v16 = vunpack.i.l.bf16 %v4056_v14  ;;  %3790 = vmatmul.mubr.msk.f32.vlgmr.msra.gmra.mrb[8].mxu1 %vm1058_vm7, %v1312_v13  ;;  %v4108_v13 = vld [vmem:[%s5355_s7 + $0x14] ss:$8 sps:$4 sm:$0xff]   ;;  %v4106_v14 = vld [vmem:[%s5355_s7 + $0x10] ss:$8 sps:$4 sm:$0xff]  }
 0x454   : > { %3901 = vmatpush3.bf16.xpose.msk.msra.mxu1 %vm4677_vm8, %v3896_v12  ;;  %v1436_v17 = vpop.permute.xlu1 %1435  ;;  %v4105_v12 = vld [vmem:[%s5355_s7 + $0x4] ss:$8 sps:$4 sm:$0xff]  }
 0x455   : > { %v3902_v18 = vpack.c.bf16 %v4058_v15, %v4057_v16  ;;  %3796 = vmatprep.mubr.msk.f32.mxu1 %vm1058_vm7, %v1436_v17 }
 0x456   : > { %v4061_v19 = vpop.permute.xlu0 %4060 }
 0x457   : > { %v4063_v20 = vunpack.i.h.bf16 %v4061_v19  ;;  %v4062_v21 = vunpack.i.l.bf16 %v4061_v19  ;;  %3904 = vmatprep.subr.msk.bf16.mxu1 %vm4677_vm8, %v3902_v18 }
 0x458   : > { %v1438_v22 = vpop.permute.xlu1 %1437 }
 0x459   : > { %v3908_v23 = vpack.c.bf16 %v4063_v20, %v4062_v21 }
 0x45a   : > { %v4066_v24 = vpop.permute.xlu0 %4065 }
 0x45b   : > { %v4068_v25 = vunpack.i.h.bf16 %v4066_v24  ;;  %v4067_v26 = vunpack.i.l.bf16 %v4066_v24  ;;  %3797 = vmatmul.mubr.msk.f32.vlgmr.msra.gmra.mrb[10].mxu1 %vm1058_vm7, %v1438_v22  ;;  %3910 = vmatprep.subr.msk.bf16.mxu0 %vm4677_vm8, %v3908_v23 }
 0x45c   : > { %3907 = vmatpush3.bf16.xpose.msk.msra.mxu1 %vm4677_vm8, %v3902_v18  ;;  %v1562_v27 = vpop.permute.xlu1 %1561  ;;  %3913 = vmatpush3.bf16.xpose.msk.msra.mxu0 %vm4677_vm8, %v3908_v23 }
 0x45d   : > { %v3914_v28 = vpack.c.bf16 %v4068_v25, %v4067_v26  ;;  %3803 = vmatprep.mubr.msk.f32.mxu1 %vm1058_vm7, %v1562_v27 }
 0x45e   : > { %v4071_v29 = vpop.permute.xlu0 %4070 }
 0x45f   : > { %v4073_v30 = vunpack.i.h.bf16 %v4071_v29  ;;  %v4072_v31 = vunpack.i.l.bf16 %v4071_v29  ;;  %3916 = vmatprep.subr.msk.bf16.mxu1 %vm4677_vm8, %v3914_v28 }
 0x460   : > { %v1564_v32 = vpop.permute.xlu1 %1563 }
 0x461   : > { %v3920_v33 = vpack.c.bf16 %v4073_v30, %v4072_v31 }
 0x462   : > { %v1688_v35 = vpop.permute.xlu0 %1687 }
 0x463   : > { %3804 = vmatmul.mubr.msk.f32.vlgmr.msra.gmra.mrb[12].mxu1 %vm1058_vm7, %v1564_v32  ;;  %3810 = vmatprep.mubr.msk.f32.mxu0 %vm1058_vm7, %v1688_v35 }
 0x464   : > { %3919 = vmatpush3.bf16.xpose.msk.msra.mxu1 %vm4677_vm8, %v3914_v28  ;;  %3922 = vmatprep.subr.msk.bf16.mxu0 %vm4677_vm8, %v3920_v33  ;;  %v1690_v36 = vpop.permute.xlu1 %1689 }
 0x465   : > { %3811 = vmatmul.mubr.msk.f32.vlgmr.msra.gmra.mrb[12].mxu0 %vm1058_vm7, %v1690_v36  ;;  %2384 = vmatprep.subr.bf16.mxu1 %v4105_v12 }
 0x466   : > { %3925 = vmatpush3.bf16.xpose.msk.msra.mxu0 %vm4677_vm8, %v3920_v33  ;;  %v1814_v37 = vpop.permute.xlu0 %1813 }
 0x467   : > { %3817 = vmatprep.mubr.msk.f32.mxu1 %vm1058_vm7, %v1814_v37 }
 0x468   : > { %v1816_v38 = vpop.permute.xlu1 %1815 }
 0x46a   : > { %v1940_v41 = vpop.permute.xlu0 %1939 }
 0x46b   : > { %3818 = vmatmul.mubr.msk.f32.vlgmr.msra.gmra.mrb[14].mxu1 %vm1058_vm7, %v1816_v38  ;;  %3824 = vmatprep.mubr.msk.f32.mxu0 %vm1058_vm7, %v1940_v41 }
 0x46c   : > { %v1942_v42 = vpop.permute.xlu1 %1941  ;;  %2385 = vmatpush1.bf16.msra.mxu1 %v4103_v11 }
 0x46d   : > { %3825 = vmatmul.mubr.msk.f32.vlgmr.msra.gmra.mrb[14].mxu0 %vm1058_vm7, %v1942_v42  ;;  %2386 = vmatprep.subr.bf16.mxu1 %v4108_v13 }
 0x470   : > { %2387 = vmatpush1.bf16.msra.mxu1 %v4106_v14 }
 0x4ab   : > { %v3777_v43 = vpop.f32.mrb[4].mxu1 }
 0x4ac   : > { %v1149_v44 = vsel %vm1148_vm9, %v3777_v43, -inf  ;;  %v1137_v45 = vpop.f32.mrb[5].mxu1 }
 0x4ad   : > { %v1147_v46 = vsel %vm1146_vm10, %v1137_v45, -inf }
 0x4ae   : > { %v1150_v47 = vmax.f32 %v1147_v46, %v1149_v44 }
 0x4b0   : > { %v1151_v48 = vrot.slane %v1150_v47, 4 }
 0x4b2   : > { %v1152_v49 = vmax.f32 %v1150_v47, %v1151_v48 }
 0x4b4   : > { %v1153_v50 = vrot.slane %v1152_v49, 2 }
 0x4b6   : > { %v1154_v51 = vmax.f32 %v1152_v49, %v1153_v50 }
 0x4b8   : > { %v1155_v52 = vrot.slane %v1154_v51, 1 }
 0x4ba   : > { %v1156_v53 = vmax.f32 %v1154_v51, %v1155_v52 }
 0x4bc   : > { %v1157_v54 = vsub.f32 %v1137_v45, %v1156_v53  ;;  %v1158_v55 = vsub.f32 %v3777_v43, %v1156_v53 }
 0x4be   : > { %v1159_v56 = vmul.f32 1.442695, %v1157_v54  ;;  %v1161_v57 = vmul.f32 1.442695, %v1158_v55 }
 0x4c0   : > { %4223 = vpow2.f32 %v1159_v56 }
 0x4c1   : > { %4225 = vpow2.f32 %v1161_v57 }
 0x4ca   : > { %v4224_v58 = vpop.eup %4223 }
 0x4cb   : > { %v4226_v59 = vpop.eup %4225  ;;  %v1163_v60 = vsel %vm1146_vm10, %v4224_v58, 0.0 }
 0x4cc   : > { %v1164_v61 = vsel %vm1148_vm9, %v4226_v59, 0.0 }
 0x4cd   : > { %v1165_v62 = vadd.f32 %v1164_v61, %v1163_v60 }
 0x4cf   : > { %v1166_v63 = vrot.slane %v1165_v62, 4 }
 0x4d1   : > { %v1167_v0 = vadd.f32 %v1166_v63, %v1165_v62 }
 0x4d3   : > { %v1168_v1 = vrot.slane %v1167_v0, 2 }
 0x4d5   : > { %v1169_v3 = vadd.f32 %v1168_v1, %v1167_v0 }
 0x4d7   : > { %v1170_v4 = vrot.slane %v1169_v3, 1 }
 0x4d9   : > { %v1171_v5 = vadd.f32 %v1170_v4, %v1169_v3 }
 0x4db   : > { %4227 = vrcp.f32 %v1171_v5 }
 0x4e5   : > { %v4228_v6 = vpop.eup %4227 }
 0x4e6   : > { %v1174_v7 = vmul.f32 %v4228_v6, %v4226_v59  ;;  %v1173_v8 = vmul.f32 %v4228_v6, %v4224_v58 }
 0x4e8   : > { %v1178_v9 = vsel %vm1148_vm9, %v1174_v7, 0.0  ;;  %v1175_v10 = vsel %vm1146_vm10, %v1173_v8, 0.0 }
 0x4e9   : > { %1179 = vadd.xlane.f32.xlu1 %v1178_v9  ;;  %1176 = vadd.xlane.f32.xlu0 %v1175_v10 }
 0x51e   : > { %v3784_v15 = vpop.f32.mrb[6].mxu1 }
 0x51f   : > { %v1275_v16 = vsel %vm1148_vm9, %v3784_v15, -inf  ;;  %v1265_v17 = vpop.f32.mrb[7].mxu1 }
 0x520   : > { %v1274_v18 = vsel %vm1146_vm10, %v1265_v17, -inf }
 0x521   : > { %v1276_v19 = vmax.f32 %v1274_v18, %v1275_v16 }
 0x523   : > { %v1277_v20 = vrot.slane %v1276_v19, 4 }
 0x525   : > { %v1278_v21 = vmax.f32 %v1276_v19, %v1277_v20 }
 0x526   : > { %v3791_v22 = vpop.f32.mrb[8].mxu1 }
 0x527   : > { %v1279_v23 = vrot.slane %v1278_v21, 2  ;;  %v1401_v24 = vsel %vm1148_vm9, %v3791_v22, -inf  ;;  %v1391_v25 = vpop.f32.mrb[9].mxu1 }
 0x528   : > { %v1400_v26 = vsel %vm1146_vm10, %v1391_v25, -inf }
 0x529   : > { %v1280_v27 = vmax.f32 %v1278_v21, %v1279_v23  ;;  %v1402_v28 = vmax.f32 %v1400_v26, %v1401_v24 }
 0x52b   : > { %v1281_v29 = vrot.slane %v1280_v27, 1  ;;  %v1403_v30 = vrot.slane %v1402_v28, 4 }
 0x52d   : > { %v1282_v31 = vmax.f32 %v1280_v27, %v1281_v29  ;;  %v1404_v32 = vmax.f32 %v1402_v28, %v1403_v30 }
 0x52e   : > { %v3798_v33 = vpop.f32.mrb[10].mxu1 }
 0x52f   : > { %v1283_v35 = vsub.f32 %v1265_v17, %v1282_v31  ;;  %v1284_v36 = vsub.f32 %v3784_v15, %v1282_v31  ;;  %v1405_v37 = vrot.slane %v1404_v32, 2  ;;  %v1527_v38 = vsel %vm1148_vm9, %v3798_v33, -inf  ;;  %v1517_v41 = vpop.f32.mrb[11].mxu1 }
 0x530   : > { %v1526_v42 = vsel %vm1146_vm10, %v1517_v41, -inf }
 0x531   : > { %v1285_v43 = vmul.f32 1.442695, %v1283_v35  ;;  %v1287_v44 = vmul.f32 1.442695, %v1284_v36  ;;  %v1406_v45 = vmax.f32 %v1404_v32, %v1405_v37  ;;  %v1528_v46 = vmax.f32 %v1526_v42, %v1527_v38 }
 0x533   : > { %4229 = vpow2.f32 %v1285_v43  ;;  %v1407_v47 = vrot.slane %v1406_v45, 1  ;;  %v1529_v48 = vrot.slane %v1528_v46, 4 }
 0x534   : > { %4231 = vpow2.f32 %v1287_v44 }
 0x535   : > { %v1408_v49 = vmax.f32 %v1406_v45, %v1407_v47  ;;  %v1530_v50 = vmax.f32 %v1528_v46, %v1529_v48 }
 0x536   : > { %v4756_v51 = vpop.f32.mrb[12].mxu1 }
 0x537   : > { %v1409_v52 = vsub.f32 %v1391_v25, %v1408_v49  ;;  %v1410_v53 = vsub.f32 %v3791_v22, %v1408_v49  ;;  %v1531_v54 = vrot.slane %v1530_v50, 2  ;;  %v1653_v55 = vsel %vm1148_vm9, %v4756_v51, -inf  ;;  %v4760_v56 = vpop.f32.mrb[13].mxu1 }
 0x538   : > { %v1652_v57 = vsel %vm1146_vm10, %v4760_v56, -inf  ;;  %v4764_v58 = vpop.f32.mrb[12].mxu0 }
 0x539   : > { %v1411_v59 = vmul.f32 1.442695, %v1409_v52  ;;  %v1413_v60 = vmul.f32 1.442695, %v1410_v53  ;;  %v1532_v61 = vmax.f32 %v1530_v50, %v1531_v54  ;;  %v1654_v62 = vmax.f32 %v1652_v57, %v1653_v55  ;;  %v4766_v63 = vpop.f32.mrb[13].mxu0 }
 0x53a   : > { %v1779_v0 = vsel %vm1148_vm9, %v4764_v58, -inf  ;;  %v1778_v1 = vsel %vm1146_vm10, %v4766_v63, -inf }
 0x53b   : > { %4233 = vpow2.f32 %v1411_v59  ;;  %v1533_v3 = vrot.slane %v1532_v61, 1  ;;  %v1655_v4 = vrot.slane %v1654_v62, 4  ;;  %v1780_v5 = vmax.f32 %v1778_v1, %v1779_v0 }
 0x53c   : > { %4235 = vpow2.f32 %v1413_v60 }
 0x53d   : > { %v4772_v6 = vpop.eup %4229  ;;  %v1534_v7 = vmax.f32 %v1532_v61, %v1533_v3  ;;  %v1656_v8 = vmax.f32 %v1654_v62, %v1655_v4  ;;  %v1781_v9 = vrot.slane %v1780_v5, 4 }
 0x53e   : > { %v4774_v10 = vpop.eup %4231  ;;  %v1289_v11 = vsel %vm1146_vm10, %v4772_v6, 0.0  ;;  %v4778_v12 = vpop.f32.mrb[14].mxu1 }
 0x53f   : > { %v1290_v13 = vsel %vm1148_vm9, %v4774_v10, 0.0  ;;  %v1535_v14 = vsub.f32 %v1517_v41, %v1534_v7  ;;  %v1536_v15 = vsub.f32 %v3798_v33, %v1534_v7  ;;  %v1657_v16 = vrot.slane %v1656_v8, 2  ;;  %v4782_v17 = vpop.f32.mrb[15].mxu1 }
 0x540   : > { %v1291_v18 = vadd.f32 %v1290_v13, %v1289_v11  ;;  %v1782_v19 = vmax.f32 %v1780_v5, %v1781_v9  ;;  %v1905_v20 = vsel %vm1148_vm9, %v4778_v12, -inf  ;;  %v1904_v21 = vsel %vm1146_vm10, %v4782_v17, -inf  ;;  %v4788_v22 = vpop.f32.mrb[14].mxu0 }
 0x541   : > { %v1537_v23 = vmul.f32 1.442695, %v1535_v14  ;;  %v1539_v24 = vmul.f32 1.442695, %v1536_v15  ;;  %v1658_v25 = vmax.f32 %v1656_v8, %v1657_v16  ;;  %v1906_v26 = vmax.f32 %v1904_v21, %v1905_v20  ;;  %v4790_v27 = vpop.f32.mrb[15].mxu0 }
 0x542   : > { %v1292_v28 = vrot.slane %v1291_v18, 4  ;;  %v1783_v29 = vrot.slane %v1782_v19, 2  ;;  %v2031_v30 = vsel %vm1148_vm9, %v4788_v22, -inf  ;;  %v2030_v31 = vsel %vm1146_vm10, %v4790_v27, -inf }
 0x543   : > { %4237 = vpow2.f32 %v1537_v23  ;;  %v1659_v32 = vrot.slane %v1658_v25, 1  ;;  %v1907_v33 = vrot.slane %v1906_v26, 4  ;;  %v2032_v35 = vmax.f32 %v2030_v31, %v2031_v30 }
 0x544   : > { %v1293_v36 = vadd.f32 %v1292_v28, %v1291_v18  ;;  %4239 = vpow2.f32 %v1539_v24  ;;  %v1784_v37 = vmax.f32 %v1782_v19, %v1783_v29 }
 0x545   : > { %v4796_v38 = vpop.eup %4233  ;;  %v1660_v41 = vmax.f32 %v1658_v25, %v1659_v32  ;;  %v1908_v42 = vmax.f32 %v1906_v26, %v1907_v33  ;;  %v2033_v43 = vrot.slane %v2032_v35, 4 }
 0x546   : > { %v4798_v44 = vpop.eup %4235  ;;  %v1415_v45 = vsel %vm1146_vm10, %v4796_v38, 0.0  ;;  %v1785_v46 = vrot.slane %v1784_v37, 1  ;;  %v1294_v47 = vrot.slane %v1293_v36, 2 }
 0x547   : > { %v1416_v48 = vsel %vm1148_vm9, %v4798_v44, 0.0  ;;  %v1661_v49 = vsub.f32 %v4760_v56, %v1660_v41  ;;  %v1662_v50 = vsub.f32 %v4756_v51, %v1660_v41  ;;  %v1909_v52 = vrot.slane %v1908_v42, 2 }
 0x548   : > { %v1417_v53 = vadd.f32 %v1416_v48, %v1415_v45  ;;  %v1786_v54 = vmax.f32 %v1784_v37, %v1785_v46  ;;  %v2034_v55 = vmax.f32 %v2032_v35, %v2033_v43  ;;  %v1295_v57 = vadd.f32 %v1294_v47, %v1293_v36 }
 0x549   : > { %v1663_v59 = vmul.f32 1.442695, %v1661_v49  ;;  %v1665_v60 = vmul.f32 1.442695, %v1662_v50  ;;  %v1910_v61 = vmax.f32 %v1908_v42, %v1909_v52 }
 0x54a   : > { %v1418_v62 = vrot.slane %v1417_v53, 4  ;;  %v1787_v0 = vsub.f32 %v4766_v63, %v1786_v54  ;;  %v1788_v1 = vsub.f32 %v4764_v58, %v1786_v54  ;;  %v2035_v3 = vrot.slane %v2034_v55, 2 }
 0x54b   : > { %4241 = vpow2.f32 %v1663_v59  ;;  %v1911_v4 = vrot.slane %v1910_v61, 1  ;;  %v1296_v5 = vrot.slane %v1295_v57, 1 }
 0x54c   : > { %v1419_v56 = vadd.f32 %v1418_v62, %v1417_v53  ;;  %4243 = vpow2.f32 %v1665_v60  ;;  %v1789_v51 = vmul.f32 1.442695, %v1787_v0  ;;  %v1791_v7 = vmul.f32 1.442695, %v1788_v1 }
 0x54d   : > { %v4808_v8 = vpop.eup %4237  ;;  %v1912_v9 = vmax.f32 %v1910_v61, %v1911_v4  ;;  %v2036_v11 = vmax.f32 %v2034_v55, %v2035_v3  ;;  %v1297_v13 = vadd.f32 %v1296_v5, %v1295_v57 }
 0x54e   : > { %v4810_v14 = vpop.eup %4239  ;;  %v1541_v63 = vsel %vm1146_vm10, %v4808_v8, 0.0  ;;  %4245 = vpow2.f32 %v1789_v51  ;;  %v1420_v58 = vrot.slane %v1419_v56, 2 }
 0x54f   : > { %v1542_v15 = vsel %vm1148_vm9, %v4810_v14, 0.0  ;;  %4247 = vpow2.f32 %v1791_v7  ;;  %v1913_v16 = vsub.f32 %v4782_v17, %v1912_v9  ;;  %v1914_v18 = vsub.f32 %v4778_v12, %v1912_v9 }
 0x550   : > { %v1543_v19 = vadd.f32 %v1542_v15, %v1541_v63  ;;  %v2037_v20 = vrot.slane %v2036_v11, 1  ;;  %4249 = vrcp.f32 %v1297_v13  ;;  %v1421_v21 = vadd.f32 %v1420_v58, %v1419_v56 }
 0x551   : > { %v1915_v23 = vmul.f32 1.442695, %v1913_v16  ;;  %v1917_v24 = vmul.f32 1.442695, %v1914_v18 }
 0x552   : > { %v1544_v25 = vrot.slane %v1543_v19, 4  ;;  %v2038_v26 = vmax.f32 %v2036_v11, %v2037_v20  ;;  %v1422_v28 = vrot.slane %v1421_v21, 1 }
 0x553   : > { %4251 = vpow2.f32 %v1915_v23 }
 0x554   : > { %v1545_v29 = vadd.f32 %v1544_v25, %v1543_v19  ;;  %4253 = vpow2.f32 %v1917_v24  ;;  %v2039_v30 = vsub.f32 %v4790_v27, %v2038_v26  ;;  %v2040_v31 = vsub.f32 %v4788_v22, %v2038_v26 }
 0x555   : > { %v4820_v32 = vpop.eup %4241  ;;  %v1423_v17 = vadd.f32 %v1422_v28, %v1421_v21 }
 0x556   : > { %v4822_v12 = vpop.eup %4243  ;;  %v1667_v33 = vsel %vm1146_vm10, %v4820_v32, 0.0  ;;  %v2041_v35 = vmul.f32 1.442695, %v2039_v30  ;;  %v2043_v36 = vmul.f32 1.442695, %v2040_v31  ;;  %v1546_v37 = vrot.slane %v1545_v29, 2 }
 0x557   : > { %v1668_v41 = vsel %vm1148_vm9, %v4822_v12, 0.0  ;;  %4255 = vrcp.f32 %v1423_v17 }
 0x558   : > { %v4828_v42 = vpop.eup %4245  ;;  %v1669_v27 = vadd.f32 %v1668_v41, %v1667_v33  ;;  %4257 = vpow2.f32 %v2041_v35  ;;  %v1547_v22 = vadd.f32 %v1546_v37, %v1545_v29  ;;  %v4109_v33 = vld [vmem:[%s5355_s7 + $0x20] ss:$8 sps:$4 sm:$0xff]   ;;  %v4111_v35 = vld [vmem:[%s5355_s7 + $0x24] ss:$8 sps:$4 sm:$0xff]  }
 0x559   : > { %v4830_v43 = vpop.eup %4247  ;;  %v1793_v45 = vsel %vm1146_vm10, %v4828_v42, 0.0  ;;  %4259 = vpow2.f32 %v2043_v36  ;;  %2388 = vmatprep.subr.bf16.mxu1 %v4111_v35  ;;  %v4180_v35 = vld [vmem:[%s5357_s9 + $0x10] sm:$0xff]  }
 0x55a   : > { %v4250_v46 = vpop.eup %4249  ;;  %v1670_v47 = vrot.slane %v1669_v27, 4  ;;  %v1794_v48 = vsel %vm1148_vm9, %v4830_v43, 0.0  ;;  %v1548_v49 = vrot.slane %v1547_v22, 1  ;;  %2389 = vmatpush1.bf16.msra.mxu1 %v4109_v33  ;;  %v4179_v33 = vld [vmem:[%s5357_s9 + $0x50] sm:$0xff]  }
 0x55b   : > { %v1795_v50 = vadd.f32 %v1794_v48, %v1793_v45  ;;  %v1299_v52 = vmul.f32 %v4250_v46, %v4772_v6  ;;  %v1300_v53 = vmul.f32 %v4250_v46, %v4774_v10 }
 0x55c   : > { %v1671_v54 = vadd.f32 %v1670_v47, %v1669_v27  ;;  %v1549_v55 = vadd.f32 %v1548_v49, %v1547_v22  ;;  %v4117_v22 = vld [vmem:[%s5355_s7 + $0x44] ss:$8 sps:$4 sm:$0xff]  }
 0x55d   : > { %v4838_v57 = vpop.eup %4251  ;;  %v1796_v59 = vrot.slane %v1795_v50, 4  ;;  %v1301_v60 = vsel %vm1146_vm10, %v1299_v52, 0.0  ;;  %v1304_v5 = vsel %vm1148_vm9, %v1300_v53, 0.0  ;;  %v4120_v52 = vld [vmem:[%s5355_s7 + $0x54] ss:$8 sps:$4 sm:$0xff]  }
 0x55e   : > { %v4841_v61 = vpop.eup %4253  ;;  %v1919_v62 = vsel %vm1146_vm10, %v4838_v57, 0.0  ;;  %1302 = vadd.xlane.f32.xlu0 %v1301_v60  ;;  %4261 = vrcp.f32 %v1549_v55  ;;  %v1672_v0 = vrot.slane %v1671_v54, 2  ;;  %v4123_v55 = vld [vmem:[%s5355_s7 + $0x64] ss:$8 sps:$4 sm:$0xff]  }
 0x55f   : > { %v1797_v1 = vadd.f32 %v1796_v59, %v1795_v50  ;;  %v1920_v6 = vsel %vm1148_vm9, %v4841_v61, 0.0  ;;  %v4115_v50 = vld [vmem:[%s5355_s7 + $0x40] ss:$8 sps:$4 sm:$0xff]  }
 0x560   : > { %v1921_v10 = vadd.f32 %v1920_v6, %v1919_v62  ;;  %v1673_v3 = vadd.f32 %v1672_v0, %v1671_v54  ;;  %v4121_v62 = vld [vmem:[%s5355_s7 + $0x60] ss:$8 sps:$4 sm:$0xff]  }
 0x561   : > { %v4256_v4 = vpop.eup %4255  ;;  %v1798_v56 = vrot.slane %v1797_v1, 2 }
 0x562   : > { %v4848_v51 = vpop.eup %4257  ;;  %v1922_v7 = vrot.slane %v1921_v10, 4  ;;  %1305 = vadd.xlane.f32.xlu0 %v1304_v5  ;;  %v1426_v9 = vmul.f32 %v4256_v4, %v4798_v44  ;;  %v1425_v11 = vmul.f32 %v4256_v4, %v4796_v38  ;;  %v1674_v13 = vrot.slane %v1673_v3, 1  ;;  %v4129_v4 = vld [vmem:[%s5355_s7 + $0x84] ss:$8 sps:$4 sm:$0xff]  }
 0x563   : > { %v4852_v63 = vpop.eup %4259  ;;  %v2045_v58 = vsel %vm1146_vm10, %v4848_v51, 0.0  ;;  %v1799_v15 = vadd.f32 %v1798_v56, %v1797_v1 }
 0x564   : > { %v1923_v16 = vadd.f32 %v1922_v7, %v1921_v10  ;;  %v2046_v18 = vsel %vm1148_vm9, %v4852_v63, 0.0  ;;  %v1675_v21 = vadd.f32 %v1674_v13, %v1673_v3  ;;  %v1430_v59 = vsel %vm1148_vm9, %v1426_v9, 0.0  ;;  %v4124_v3 = vld [vmem:[%s5355_s7 + $0x70] ss:$8 sps:$4 sm:$0xff]   ;;  %v4132_v7 = vld [vmem:[%s5355_s7 + $0x94] ss:$8 sps:$4 sm:$0xff]  }
 0x565   : > { %v2047_v19 = vadd.f32 %v2046_v18, %v2045_v58  ;;  %v1800_v20 = vrot.slane %v1799_v15, 1  ;;  %v1427_v60 = vsel %vm1146_vm10, %v1425_v11, 0.0  ;;  %v4130_v13 = vld [vmem:[%s5355_s7 + $0x90] ss:$8 sps:$4 sm:$0xff]   ;;  %v4138_v18 = vld [vmem:[%s5355_s7 + $0xb4] ss:$8 sps:$4 sm:$0xff]  }
 0x566   : > { %v1924_v23 = vrot.slane %v1923_v16, 2  ;;  %4263 = vrcp.f32 %v1675_v21  ;;  %v4139_v21 = vld [vmem:[%s5355_s7 + $0xc0] ss:$8 sps:$4 sm:$0xff]  }
 0x567   : > { %v2048_v24 = vrot.slane %v2047_v19, 4  ;;  %v1801_v25 = vadd.f32 %v1800_v20, %v1799_v15  ;;  %v4141_v20 = vld [vmem:[%s5355_s7 + $0xc4] ss:$8 sps:$4 sm:$0xff]  }
 0x568   : > { %v4262_v44 = vpop.eup %4261  ;;  %v1925_v38 = vadd.f32 %v1924_v23, %v1923_v16  ;;  %v4133_v16 = vld [vmem:[%s5355_s7 + $0xa0] ss:$8 sps:$4 sm:$0xff]   ;;  %v4144_v23 = vld [vmem:[%s5355_s7 + $0xd4] ss:$8 sps:$4 sm:$0xff]  }
 0x569   : > { %v2049_v26 = vadd.f32 %v2048_v24, %v2047_v19  ;;  %4265 = vrcp.f32 %v1801_v25  ;;  %v1552_v28 = vmul.f32 %v4262_v44, %v4810_v14  ;;  %v1551_v29 = vmul.f32 %v4262_v44, %v4808_v8  ;;  %v4112_v8 = vld [vmem:[%s5355_s7 + $0x30] ss:$8 sps:$4 sm:$0xff]   ;;  %v4114_v14 = vld [vmem:[%s5355_s7 + $0x34] ss:$8 sps:$4 sm:$0xff]   ;;  %v4147_v25 = vld [vmem:[%s5355_s7 + $0xe4] ss:$8 sps:$4 sm:$0xff]  }
 0x56a   : > { %v1926_v30 = vrot.slane %v1925_v38, 1  ;;  %2390 = vmatprep.subr.bf16.mxu1 %v4114_v14  ;;  %v4136_v19 = vld [vmem:[%s5355_s7 + $0xb0] ss:$8 sps:$4 sm:$0xff]   ;;  %v4145_v44 = vld [vmem:[%s5355_s7 + $0xe0] ss:$8 sps:$4 sm:$0xff]  }
 0x56b   : > { %v2050_v31 = vrot.slane %v2049_v26, 2  ;;  %2391 = vmatpush1.bf16.msra.mxu1 %v4112_v8  ;;  %v1553_v1 = vsel %vm1146_vm10, %v1551_v29, 0.0  ;;  %v4142_v24 = vld [vmem:[%s5355_s7 + $0xd0] ss:$8 sps:$4 sm:$0xff]   ;;  %v4175_v29 = vld [vmem:[%s5357_s9 + $0x40] sm:$0xff]  }
 0x56c   : > { %v1927_v17 = vadd.f32 %v1926_v30, %v1925_v38  ;;  %2392 = vmatprep.subr.bf16.mxu1 %v4117_v22  ;;  %v4150_v38 = vld [vmem:[%s5355_s7 + $0xf4] ss:$8 sps:$4 sm:$0xff]   ;;  %v4176_v30 = vld [vmem:[%s5357_s9] sm:$0xff]   ;;  %3635 = vmatprep.subr.bf16.mxu0 %v4175_v29 }
 0x56d   : > { %v2051_v36 = vadd.f32 %v2050_v31, %v2049_v26  ;;  %v4148_v26 = vld [vmem:[%s5355_s7 + $0xf0] ss:$8 sps:$4 sm:$0xff]   ;;  %v4177_v31 = vld [vmem:[%s5357_s9 + $0x48] sm:$0xff]   ;;  %3636 = vmatpush3.bf16.msra.mxu0 %v4176_v30  ;;  %v4183_v8 = vld [vmem:[%s5357_s9 + $0x60] sm:$0xff]  }
 0x56e   : > { %4267 = vrcp.f32 %v1927_v17  ;;  %v4178_v17 = vld [vmem:[%s5357_s9 + $0x8] sm:$0xff]   ;;  %3637 = vmatprep.subr.bf16.mxu0 %v4177_v31  ;;  %v4172_v30 = vld [vmem:[%s5355_s7 + $0x170] ss:$8 sps:$4 sm:$0xff]  }
 0x56f   : > { %v2052_v37 = vrot.slane %v2051_v36, 1  ;;  %2393 = vmatpush1.bf16.msra.mxu1 %v4115_v50 }
 0x570   : > { %v4264_v41 = vpop.eup %4263  ;;  %2394 = vmatprep.subr.bf16.mxu1 %v4120_v52 }
 0x571   : > { %v2053_v27 = vadd.f32 %v2052_v37, %v2051_v36  ;;  %v1678_v45 = vmul.f32 %v4264_v41, %v4822_v12  ;;  %v1677_v46 = vmul.f32 %v4264_v41, %v4820_v32  ;;  %3638 = vmatpush3.bf16.msra.mxu0 %v4178_v17  ;;  %v4181_v36 = vld [vmem:[%s5357_s9 + $0x58] sm:$0xff]  }
 0x572   : > { %3639 = vmatprep.subr.bf16.mxu0 %v4179_v33  ;;  %v4182_v37 = vld [vmem:[%s5357_s9 + $0x18] sm:$0xff]   ;;  %v4184_v33 = vld [vmem:[%s5357_s9 + $0x20] sm:$0xff]  }
 0x573   : > { %v4266_v47 = vpop.eup %4265  ;;  %4269 = vrcp.f32 %v2053_v27  ;;  %v1682_v5 = vsel %vm1148_vm9, %v1678_v45, 0.0  ;;  %v1679_v56 = vsel %vm1146_vm10, %v1677_v46, 0.0 }
 0x574   : > { %v1804_v48 = vmul.f32 %v4266_v47, %v4830_v43  ;;  %v1803_v49 = vmul.f32 %v4266_v47, %v4828_v42  ;;  %v4118_v42 = vld [vmem:[%s5355_s7 + $0x50] ss:$8 sps:$4 sm:$0xff]  }
 0x575   : > { %2395 = vmatpush1.bf16.msra.mxu1 %v4118_v42  ;;  %3640 = vmatpush3.bf16.msra.mxu0 %v4180_v35  ;;  %v4185_v35 = vld [vmem:[%s5357_s9 + $0x68] sm:$0xff]  }
 0x576   : > { %v1808_v12 = vsel %vm1148_vm9, %v1804_v48, 0.0  ;;  %v1805_v32 = vsel %vm1146_vm10, %v1803_v49, 0.0  ;;  %2396 = vmatprep.subr.bf16.mxu1 %v4123_v55  ;;  %3641 = vmatprep.subr.bf16.mxu0 %v4181_v36  ;;  %v1177_v14 = vpop.xlane.xlu0 %1176  ;;  %v1180_v27 = vpop.xlane.xlu1 %1179  ;;  %v4186_v36 = vld [vmem:[%s5357_s9 + $0x28] sm:$0xff]  }
 0x577   : > { %1809 = vadd.xlane.f32.xlu0 %v1808_v12  ;;  %1806 = vadd.xlane.f32.xlu1 %v1805_v32 }
 0x578   : > { %v4268_v53 = vpop.eup %4267 }
 0x579   : > { %v1930_v43 = vmul.f32 %v4268_v53, %v4841_v61  ;;  %v1929_v54 = vmul.f32 %v4268_v53, %v4838_v57  ;;  %v4126_v57 = vld [vmem:[%s5355_s7 + $0x74] ss:$8 sps:$4 sm:$0xff]   ;;  %v1556_v61 = vsel %vm1148_vm9, %v1552_v28, 0.0  ;;  %2397 = vmatpush1.bf16.msra.mxu1 %v4121_v62  ;;  %v4153_v28 = vld [vmem:[%s5355_s7 + $0x104] ss:$8 sps:$4 sm:$0xff]   ;;  %3642 = vmatpush3.bf16.msra.mxu0 %v4182_v37 }
 0x57a   : > { %2398 = vmatprep.subr.bf16.mxu1 %v4126_v57  ;;  %3643 = vmatprep.subr.bf16.mxu0 %v4183_v8  ;;  %v4187_v37 = vld [vmem:[%s5357_s9 + $0x70] sm:$0xff]  }
 0x57b   : > { %1431 = vadd.xlane.f32.xlu0 %v1430_v59  ;;  %1428 = vadd.xlane.f32.xlu1 %v1427_v60  ;;  %v1934_v9 = vsel %vm1148_vm9, %v1930_v43, 0.0  ;;  %v1931_v11 = vsel %vm1146_vm10, %v1929_v54, 0.0  ;;  %v4188_v8 = vld [vmem:[%s5357_s9 + $0x30] sm:$0xff]  }
 0x57d   : > { %v4270_v0 = vpop.eup %4269  ;;  %2399 = vmatpush1.bf16.msra.mxu1 %v4124_v3  ;;  %3644 = vmatpush3.bf16.msra.mxu0 %v4184_v33  ;;  %v4200_v33 = vld [vmem:[%s5357_s9 + $0xa0] sm:$0xff]  }
 0x57e   : > { %v2056_v6 = vmul.f32 %v4270_v0, %v4852_v63  ;;  %v2055_v10 = vmul.f32 %v4270_v0, %v4848_v51  ;;  %v4127_v51 = vld [vmem:[%s5355_s7 + $0x80] ss:$8 sps:$4 sm:$0xff]   ;;  %2400 = vmatprep.subr.bf16.mxu1 %v4129_v4  ;;  %v4135_v63 = vld [vmem:[%s5355_s7 + $0xa4] ss:$8 sps:$4 sm:$0xff]   ;;  %3645 = vmatprep.subr.bf16.mxu0 %v4185_v35 }
 0x57f   : > { %1557 = vadd.xlane.f32.xlu0 %v1556_v61  ;;  %1554 = vadd.xlane.f32.xlu1 %v1553_v1  ;;  %v4201_v35 = vld [vmem:[%s5357_s9 + $0xe8] sm:$0xff]  }
 0x580   : > { %v2060_v58 = vsel %vm1148_vm9, %v2056_v6, 0.0  ;;  %v2057_v15 = vsel %vm1146_vm10, %v2055_v10, 0.0 }
 0x581   : > { %2401 = vmatpush1.bf16.msra.mxu1 %v4127_v51  ;;  %3646 = vmatpush3.bf16.msra.mxu0 %v4186_v36  ;;  %v4202_v36 = vld [vmem:[%s5357_s9 + $0xa8] sm:$0xff]  }
 0x582   : > { %2402 = vmatprep.subr.bf16.mxu1 %v4132_v7  ;;  %3647 = vmatprep.subr.bf16.mxu0 %v4187_v37  ;;  %v4203_v37 = vld [vmem:[%s5357_s9 + $0xf0] sm:$0xff]  }
 0x583   : > { %1683 = vadd.xlane.f32.xlu0 %v1682_v5  ;;  %1680 = vadd.xlane.f32.xlu1 %v1679_v56 }
 0x585   : > { %2403 = vmatpush1.bf16.msra.mxu1 %v4130_v13  ;;  %3648 = vmatpush3.bf16.msra.mxu0 %v4188_v8  ;;  %v4204_v8 = vld [vmem:[%s5357_s9 + $0xb0] sm:$0xff]  }
 0x586   : > { %2404 = vmatprep.subr.bf16.mxu1 %v4135_v63 }
 0x587   : > { %1935 = vadd.xlane.f32.xlu0 %v1934_v9  ;;  %1932 = vadd.xlane.f32.xlu1 %v1931_v11 }
 0x589   : > { %2405 = vmatpush1.bf16.msra.mxu1 %v4133_v16 }
 0x58a   : > { %2406 = vmatprep.subr.bf16.mxu1 %v4138_v18  ;;  %v4156_v18 = vld [vmem:[%s5355_s7 + $0x114] ss:$8 sps:$4 sm:$0xff]  }
 0x58b   : > { %2061 = vadd.xlane.f32.xlu0 %v2060_v58  ;;  %2058 = vadd.xlane.f32.xlu1 %v2057_v15  ;;  %v4151_v15 = vld [vmem:[%s5355_s7 + $0x100] ss:$8 sps:$4 sm:$0xff]  }
 0x58d   : > { %2407 = vmatpush1.bf16.msra.mxu1 %v4136_v19  ;;  %v4157_v19 = vld [vmem:[%s5355_s7 + $0x120] ss:$8 sps:$4 sm:$0xff]  }
 0x58e   : > { %2408 = vmatprep.subr.bf16.mxu1 %v4141_v20  ;;  %v4162_v20 = vld [vmem:[%s5355_s7 + $0x134] ss:$8 sps:$4 sm:$0xff]  }
 0x591   : > { %2409 = vmatpush1.bf16.msra.mxu1 %v4139_v21  ;;  %v4165_v21 = vld [vmem:[%s5355_s7 + $0x144] ss:$8 sps:$4 sm:$0xff]  }
 0x592   : > { %2410 = vmatprep.subr.bf16.mxu1 %v4144_v23  ;;  %v4163_v23 = vld [vmem:[%s5355_s7 + $0x140] ss:$8 sps:$4 sm:$0xff]  }
 0x595   : > { %2411 = vmatpush1.bf16.msra.mxu1 %v4142_v24  ;;  %v4168_v24 = vld [vmem:[%s5355_s7 + $0x154] ss:$8 sps:$4 sm:$0xff]  }
 0x596   : > { %2412 = vmatprep.subr.bf16.mxu1 %v4147_v25  ;;  %v4166_v25 = vld [vmem:[%s5355_s7 + $0x150] ss:$8 sps:$4 sm:$0xff]  }
 0x599   : > { %2413 = vmatpush1.bf16.msra.mxu1 %v4145_v44  ;;  %v4171_v44 = vld [vmem:[%s5355_s7 + $0x164] ss:$8 sps:$4 sm:$0xff]  }
 0x59a   : > { %2414 = vmatprep.subr.bf16.mxu1 %v4150_v38  ;;  %v4169_v38 = vld [vmem:[%s5355_s7 + $0x160] ss:$8 sps:$4 sm:$0xff]  }
 0x59d   : > { %2415 = vmatpush1.bf16.msra.mxu1 %v4148_v26  ;;  %v4174_v26 = vld [vmem:[%s5355_s7 + $0x174] ss:$8 sps:$4 sm:$0xff]  }
 0x59e   : > { %2427 = vmatprep.subr.bf16.mxu1 %v4153_v28 }
 0x5eb   : > { %v1303_v41 = vpop.xlane.xlu0 %1302 }
 0x5ec   : > { %v1307_v49 = vadd.f32 %v1303_v41, %v1177_v14  ;;  %v4189_v14 = vld [vmem:[%s5357_s9 + $0x78] sm:$0xff]  }
 0x5ed   : > { %v4190_v41 = vld [vmem:[%s5357_s9 + $0x38] sm:$0xff]   ;;  %3649 = vmatprep.subr.bf16.mxu0 %v4189_v14 }
 0x5ee   : > { %3650 = vmatpush3.bf16.msra.mxu0 %v4190_v41  ;;  %v4205_v14 = vld [vmem:[%s5357_s9 + $0xf8] sm:$0xff]  }
 0x5ef   : > { %v1306_v22 = vpop.xlane.xlu0 %1305  ;;  %v4206_v41 = vld [vmem:[%s5357_s9 + $0xb8] sm:$0xff]  }
 0x5f0   : > { %v1308_v50 = vadd.f32 %v1306_v22, %v1180_v27  ;;  %v4191_v27 = vld [vmem:[%s5357_s9 + $0xc0] sm:$0xff]   ;;  %v2134_v22 = vlaneseq }
 0x5f1   : > { %3657 = vmatprep.subr.bf16.mxu0 %v4191_v27  ;;  %v4207_v27 = vld [vmem:[%s5357_s9 + $0x140] sm:$0xff]  }
 0x604   : > { %v1810_v45 = vpop.xlane.xlu0 %1809  ;;  %v1807_v46 = vpop.xlane.xlu1 %1806 }
 0x608   : > { %v1432_v47 = vpop.xlane.xlu0 %1431  ;;  %v1429_v48 = vpop.xlane.xlu1 %1428 }
 0x609   : > { %v1434_v32 = vadd.f32 %v1432_v47, %v1308_v50  ;;  %v1433_v53 = vadd.f32 %v1429_v48, %v1307_v49  ;;  %v2132_v47 = vld [vmem:[%s5356_s8] sm:$0x3] }
 0x60c   : > { %v1558_v52 = vpop.xlane.xlu0 %1557  ;;  %v1555_v12 = vpop.xlane.xlu1 %1554 }
 0x60d   : > { %v1560_v42 = vadd.f32 %v1558_v52, %v1434_v32  ;;  %v1559_v43 = vadd.f32 %v1555_v12, %v1433_v53 }
 0x610   : > { %v1684_v54 = vpop.xlane.xlu0 %1683  ;;  %v1681_v55 = vpop.xlane.xlu1 %1680 }
 0x611   : > { %v1686_v59 = vadd.f32 %v1684_v54, %v1560_v42  ;;  %v1685_v60 = vadd.f32 %v1681_v55, %v1559_v43 }
 0x613   : > { %v1812_v62 = vadd.f32 %v1810_v45, %v1686_v59  ;;  %v1811_v0 = vadd.f32 %v1807_v46, %v1685_v60  ;;  %v2135_v45 = vshrl.u32 %v2134_v22, 7  ;;  %v4208_v22 = vld [vmem:[%s5357_s9 + $0x100] sm:$0xff]  }
 0x614   : > { %v1936_v57 = vpop.xlane.xlu0 %1935  ;;  %v1933_v61 = vpop.xlane.xlu1 %1932 }
 0x615   : > { %v1938_v1 = vadd.f32 %v1936_v57, %v1812_v62  ;;  %v1937_v6 = vadd.f32 %v1933_v61, %v1811_v0  ;;  %v2136_v46 = vsub.s32 0, %v2135_v45  ;;  %v2140_v48 = vsub.s32 1, %v2135_v45  ;;  %v4209_v45 = vld [vmem:[%s5357_s9 + $0x148] sm:$0xff]  }
 0x617   : > { %v2137_v49 = vrot.slane %v2132_v47, %v2136_v46  ;;  %v2141_v50 = vrot.slane %v2132_v47, %v2140_v48  ;;  %v4210_v46 = vld [vmem:[%s5357_s9 + $0x108] sm:$0xff]   ;;  %v4211_v47 = vld [vmem:[%s5357_s9 + $0x150] sm:$0xff]  }
 0x618   : > { %v2062_v10 = vpop.xlane.xlu0 %2061  ;;  %v2059_v3 = vpop.xlane.xlu1 %2058  ;;  %v4212_v48 = vld [vmem:[%s5357_s9 + $0x110] sm:$0xff]  }
 0x619   : > { %v2064_v4 = vadd.f32 %v2062_v10, %v1938_v1  ;;  %v2063_v5 = vadd.f32 %v2059_v3, %v1937_v6 }
 0x61b   : > { %v2066_v56 = vmul.f32 0.125, %v2064_v4  ;;  %v2065_v51 = vmul.f32 0.125, %v2063_v5 }
 0x61d   : > { %v2068_v7 = vmul.f32 %v2066_v56, %v4636_v39  ;;  %v2067_v9 = vmul.f32 %v2065_v51, %v4638_v40  ;;  %v4154_v39 = vld [vmem:[%s5355_s7 + $0x110] ss:$8 sps:$4 sm:$0xff]   ;;  %v4159_v40 = vld [vmem:[%s5355_s7 + $0x124] ss:$8 sps:$4 sm:$0xff]  }
 0x61f   : > { %v2071_v11 = vrot.slane %v2067_v9, 1  ;;  %v2072_v13 = vrot.slane %v2068_v7, 1  ;;  %v2081_v16 = vpack.c.bf16 %v2068_v7, %v2067_v9  ;;  %v2077_v28 = vrot.slane %v2068_v7, 2 }
 0x620   : > { %v2076_v29 = vrot.slane %v2067_v9, 2 }
 0x621   : > { %v2073_v63 = vsel %vm536_vm1, %v2071_v11, %v2072_v13 }
 0x622   : > { %v2082_v58 = vpack.c.bf16 %v2072_v13, %v2073_v63  ;;  %v2078_v31 = vsel %vm551_vm0, %v2076_v29, %v2077_v28  ;;  %v4196_v29 = vld [vmem:[%s5357_s9 + $0x90] sm:$0xff]  }
 0x623   : > { %v2083_v17 = vpack.c.bf16 %v2077_v28, %v2078_v31  ;;  %v4195_v28 = vld [vmem:[%s5357_s9 + $0xd0] sm:$0xff]   ;;  %v4198_v31 = vld [vmem:[%s5357_s9 + $0x98] sm:$0xff]  }
 0x624   : > { %2416 = vmatprep.mubr.bf16.mxu1 %v2082_v58 }
 0x625   : > { %2417 = vmatmul.mubr.bf16.vlgmr.msra.gmra.mrb[16].mxu1 %v2081_v16  ;;  %v4192_v16 = vld [vmem:[%s5357_s9 + $0x80] sm:$0xff]  }
 0x626   : > { %2428 = vmatpush1.bf16.msra.mxu1 %v4151_v15  ;;  %2459 = vmatprep.mubr.bf16.mxu1 %v4373_v34  ;;  %v4160_v34 = vld [vmem:[%s5355_s7 + $0x130] ss:$8 sps:$4 sm:$0xff]  }
 0x627   : > { %2429 = vmatprep.subr.bf16.mxu1 %v4156_v18 }
 0x62a   : > { %2430 = vmatpush1.bf16.msra.mxu1 %v4154_v39 }
 0x62b   : > { %2431 = vmatprep.subr.bf16.mxu1 %v4159_v40 }
 0x62e   : > { %2432 = vmatpush1.bf16.msra.mxu1 %v4157_v19  ;;  %v4193_v19 = vld [vmem:[%s5357_s9 + $0xc8] sm:$0xff]  }
 0x62f   : > { %2433 = vmatprep.subr.bf16.mxu1 %v4162_v20 }
 0x632   : > { %2434 = vmatpush1.bf16.msra.mxu1 %v4160_v34 }
 0x633   : > { %2435 = vmatprep.subr.bf16.mxu1 %v4165_v21 }
 0x636   : > { %2436 = vmatpush1.bf16.msra.mxu1 %v4163_v23 }
 0x637   : > { %2437 = vmatprep.subr.bf16.mxu1 %v4168_v24 }
 0x63a   : > { %2438 = vmatpush1.bf16.msra.mxu1 %v4166_v25 }
 0x63b   : > { %2439 = vmatprep.subr.bf16.mxu1 %v4171_v44 }
 0x63e   : > { %2440 = vmatpush1.bf16.msra.mxu1 %v4169_v38 }
 0x63f   : > { %2441 = vmatprep.subr.bf16.mxu1 %v4174_v26  ;;  %v4194_v26 = vld [vmem:[%s5357_s9 + $0x88] sm:$0xff]  }
 0x642   : > { %2442 = vmatpush1.bf16.msra.mxu1 %v4172_v30  ;;  %v4197_v30 = vld [vmem:[%s5357_s9 + $0xd8] sm:$0xff]  }
 0x643   : > { %3827 = vmatprep.subr.mxu1 %v4374_v2 }
 0x645   : > { %2460 = vmatmul.mubr.bf16.vlgmr.msra.gmra.mrb[16].mxu1 %v2083_v17  ;;  %v4199_v17 = vld [vmem:[%s5357_s9 + $0xe0] sm:$0xff]  }
 0x646   : > { %3829 = vmatprep.mubr.msk.f32.mxu1 %vm4376_vm6, %v4374_v2 }
 0x718   : > { %v2461_v52 = vpop.f32.mrb[16].mxu1 }
 0x719   : > { %v3956_v12 = vadd.f32 %v2461_v52, %v2137_v49  ;;  %v2463_v32 = vpop.f32.mrb[17].mxu1  ;;  %v4215_v52 = vld [vmem:[%s5357_s9 + $0x160] sm:$0xff]  }
 0x71a   : > { %v3957_v53 = vadd.f32 %v2463_v32, %v2141_v50  ;;  %v2465_v42 = vpop.f32.mrb[18].mxu1  ;;  %v4217_v32 = vld [vmem:[%s5357_s9 + $0x168] sm:$0xff]  }
 0x71b   : > { %v2470_v43 = vmax.f32 %v3956_v12, 0.0  ;;  %v3958_v54 = vadd.f32 %v2465_v42, %v2137_v49  ;;  %v2467_v55 = vpop.f32.mrb[19].mxu1  ;;  %v4213_v49 = vld [vmem:[%s5357_s9 + $0x158] sm:$0xff]   ;;  %v4216_v12 = vld [vmem:[%s5357_s9 + $0x120] sm:$0xff]   ;;  %v4219_v42 = vld [vmem:[%s5357_s9 + $0x170] sm:$0xff]  }
 0x71c   : > { %v2471_v59 = vmax.f32 %v3957_v53, 0.0  ;;  %v3959_v60 = vadd.f32 %v2467_v55, %v2141_v50  ;;  %v4214_v50 = vld [vmem:[%s5357_s9 + $0x118] sm:$0xff]   ;;  %v4218_v53 = vld [vmem:[%s5357_s9 + $0x128] sm:$0xff]  }
 0x71d   : > { %v2472_v62 = vmax.f32 %v3958_v54, 0.0  ;;  %v2478_v57 = vrot.slane %v2470_v43, 1  ;;  %v4221_v54 = vld [vmem:[%s5357_s9 + $0x178] sm:$0xff]  }
 0x71e   : > { %v2473_v0 = vmax.f32 %v3959_v60, 0.0  ;;  %v2481_v1 = vrot.slane %v2471_v59, 1  ;;  %v4222_v55 = vld [vmem:[%s5357_s9 + $0x138] sm:$0xff]   ;;  %v3119_v60 = vld [vmem:[%s5359_s11 + $0x8] sm:$0xff] }
 0x71f   : > { %v2479_v61 = vrot.slane %v2472_v62, 1 }
 0x720   : > { %v2482_v6 = vrot.slane %v2473_v0, 1 }
 0x721   : > { %v2480_v10 = vsel %vm536_vm1, %v2478_v57, %v2479_v61  ;;  %v2490_v3 = vmax.f32 %v2472_v62, %v2479_v61  ;;  %v3120_v62 = vld [vmem:[%s5359_s11 + $0x10] sm:$0xff]  ;;  %v3121_v61 = vld [vmem:[%s5359_s11 + $0x18] sm:$0xff] }
 0x722   : > { %v2488_v4 = vmax.f32 %v2470_v43, %v2480_v10  ;;  %v2483_v5 = vsel %vm536_vm1, %v2481_v1, %v2482_v6  ;;  %v2491_v56 = vmax.f32 %v2473_v0, %v2482_v6  ;;  %v4220_v43 = vld [vmem:[%s5357_s9 + $0x130] sm:$0xff]   ;;  %v4383_v0 = vmov 0.0|0.0   ;;  %v3122_v6 = vld [vmem:[%s5359_s11 + $0x20] sm:$0xff]  ;;  %v3123_v10 = vld [vmem:[%s5359_s11 + $0x28] sm:$0xff] }
 0x723   : > { %v2497_v51 = vrot.slane %v2490_v3, 1  ;;  %v2507_v7 = vrot.slane %v2490_v3, 2  ;;  %v2489_v9 = vmax.f32 %v2471_v59, %v2483_v5  ;;  %v3118_v59 = vld [vmem:[%s5359_s11] sm:$0xff]  ;;  %v3930_v1 = vpack.c.bf16 %v3121_v61, %v3120_v62  ;;  %v3125_v5 = vld [vmem:[%s5359_s11 + $0x38] sm:$0xff] }
 0x724   : > { %v2516_v11 = vpack.c.bf16 %v2490_v3, %v2488_v4  ;;  %v2500_v13 = vrot.slane %v2491_v56, 1  ;;  %v2496_v63 = vrot.slane %v2488_v4, 1  ;;  %v2510_v58 = vrot.slane %v2491_v56, 2 }
 0x725   : > { %v2517_v15 = vpack.c.bf16 %v2491_v56, %v2489_v9  ;;  %v2499_v18 = vrot.slane %v2489_v9, 1  ;;  %v2509_v39 = vrot.slane %v2489_v9, 2  ;;  %v2506_v40 = vrot.slane %v2488_v4, 2  ;;  %v3124_v4 = vld [vmem:[%s5359_s11 + $0x30] sm:$0xff] }
 0x726   : > { %v2498_v20 = vsel %vm536_vm1, %v2496_v63, %v2497_v51  ;;  %v3927_v57 = vpack.c.bf16 %v3119_v60, %v3118_v59  ;;  %v3933_v3 = vpack.c.bf16 %v3123_v10, %v3122_v6  ;;  %v3936_v56 = vpack.c.bf16 %v3125_v5, %v3124_v4  ;;  %v3134_v60 = vld [vmem:[%s5360_s12] sm:$0x1] }
 0x727   : > { %2945 = vmatprep.mubr.bf16.mxu0 %v2517_v15  ;;  %v2501_v34 = vsel %vm536_vm1, %v2499_v18, %v2500_v13  ;;  %v2518_v21 = vpack.c.bf16 %v2497_v51, %v2498_v20  ;;  %v2511_v23 = vsel %vm551_vm0, %v2509_v39, %v2510_v58  ;;  %v2508_v24 = vsel %vm551_vm0, %v2506_v40, %v2507_v7  ;;  %v3126_v51 = vld [vmem:[%s5359_s11 + $0x40] sm:$0xff]  ;;  %v3131_v15 = vld [vmem:[%s5359_s11 + $0x68] sm:$0xff]  ;;  %v3132_v18 = vld [vmem:[%s5359_s11 + $0x70] sm:$0xff] }
 0x728   : > { %2946 = vmatmul.mubr.bf16.vlgmr.msra.gmra.mrb[16].mxu0 %v2516_v11  ;;  %v2519_v25 = vpack.c.bf16 %v2500_v13, %v2501_v34  ;;  %v2521_v44 = vpack.c.bf16 %v2510_v58, %v2511_v23  ;;  %v5086_v38 = vpack.c.bf16 %v2507_v7, %v2508_v24  ;;  %v3127_v7 = vld [vmem:[%s5359_s11 + $0x48] sm:$0xff]  ;;  %v3128_v11 = vld [vmem:[%s5359_s11 + $0x50] sm:$0xff]  ;;  %v3129_v13 = vld [vmem:[%s5359_s11 + $0x58] sm:$0xff] }
 0x729   : > { %3658 = vmatpush3.bf16.msra.mxu0 %v4192_v16  ;;  %v3939_v9 = vpack.c.bf16 %v3127_v7, %v3126_v51  ;;  %v3942_v63 = vpack.c.bf16 %v3129_v13, %v3128_v11  ;;  %v3130_v58 = vld [vmem:[%s5359_s11 + $0x60] sm:$0xff]  ;;  %v3133_v39 = vld [vmem:[%s5359_s11 + $0x78] sm:$0xff] }
 0x72a   : > { %2986 = vmatprep.mubr.bf16.mxu0 %v2519_v25  ;;  %3659 = vmatprep.subr.bf16.mxu0 %v4193_v19  ;;  %v3945_v16 = vpack.c.bf16 %v3131_v15, %v3130_v58  ;;  %v3948_v40 = vpack.c.bf16 %v3133_v39, %v3132_v18  ;;  %v3526_v25 = vld [vmem:[%s5358_s10] ss:$0 sm:$0xff] }
 0x72d   : > { %3660 = vmatpush3.bf16.msra.mxu0 %v4194_v26 }
 0x72e   : > { %3661 = vmatprep.subr.bf16.mxu0 %v4195_v28 }
 0x731   : > { %3662 = vmatpush3.bf16.msra.mxu0 %v4196_v29 }
 0x732   : > { %3663 = vmatprep.subr.bf16.mxu0 %v4197_v30 }
 0x735   : > { %3664 = vmatpush3.bf16.msra.mxu0 %v4198_v31 }
 0x736   : > { %3665 = vmatprep.subr.bf16.mxu0 %v4199_v17 }
 0x739   : > { %3666 = vmatpush3.bf16.msra.mxu0 %v4200_v33 }
 0x73a   : > { %3667 = vmatprep.subr.bf16.mxu0 %v4201_v35 }
 0x73d   : > { %3668 = vmatpush3.bf16.msra.mxu0 %v4202_v36 }
 0x73e   : > { %3669 = vmatprep.subr.bf16.mxu0 %v4203_v37 }
 0x741   : > { %3670 = vmatpush3.bf16.msra.mxu0 %v4204_v8 }
 0x742   : > { %3671 = vmatprep.subr.bf16.mxu0 %v4205_v14 }
 0x745   : > { %3672 = vmatpush3.bf16.msra.mxu0 %v4206_v41 }
 0x746   : > { %3679 = vmatprep.subr.bf16.mxu0 %v4207_v27 }
 0x748   : > { %2987 = vmatmul.mubr.bf16.vlgmr.msra.gmra.mrb[20].mxu0 %v2518_v21 }
 0x749   : > { %3680 = vmatpush3.bf16.msra.mxu0 %v4208_v22  ;;  %3027 = vmatprep.mubr.bf16.mxu0 %v2521_v44 }
 0x74a   : > { %3681 = vmatprep.subr.bf16.mxu0 %v4209_v45 }
 0x74d   : > { %3682 = vmatpush3.bf16.msra.mxu0 %v4210_v46 }
 0x74e   : > { %3683 = vmatprep.subr.bf16.mxu0 %v4211_v47 }
 0x751   : > { %3684 = vmatpush3.bf16.msra.mxu0 %v4212_v48 }
 0x752   : > { %3685 = vmatprep.subr.bf16.mxu0 %v4213_v49 }
 0x755   : > { %3686 = vmatpush3.bf16.msra.mxu0 %v4214_v50 }
 0x756   : > { %3687 = vmatprep.subr.bf16.mxu0 %v4215_v52 }
 0x759   : > { %3688 = vmatpush3.bf16.msra.mxu0 %v4216_v12  ;;  %v4384_v12 = vmov 0.125  }
 0x75a   : > { %3689 = vmatprep.subr.bf16.mxu0 %v4217_v32  ;;  %v3206_v32 = vld [vmem:[%s5361_s13] sm:$0xff] }
 0x75d   : > { %3690 = vmatpush3.bf16.msra.mxu0 %v4218_v53  ;;  %v3207_v53 = vld [vmem:[%s5361_s13 + $0x8] sm:$0xff] }
 0x75e   : > { %3691 = vmatprep.subr.bf16.mxu0 %v4219_v42  ;;  %v3951_v42 = vpack.c.bf16 %v3207_v53, %v3206_v32 }
 0x761   : > { %3692 = vmatpush3.bf16.msra.mxu0 %v4220_v43 }
 0x762   : > { %3693 = vmatprep.subr.bf16.mxu0 %v4221_v54 }
 0x765   : > { %3694 = vmatpush3.bf16.msra.mxu0 %v4222_v55  ;;  %v3209_v55 = vld [vmem:[%s5361_s13 + $0x18] sm:$0xff] }
 0x766   : > { %3926 = vmatprep.subr.bf16.mxu0 %v4383_v0 }
 0x768   : > { %3028 = vmatmul.mubr.bf16.vlgmr.msra.gmra.mrb[24].mxu0 %v5086_v38 }
 0x769   : > { %3864 = vmatprep.mubr.msk.f32.mxu0 %vm4376_vm6, %v4374_v2  ;;  %3928 = vmatpush3.bf16.msra.mxu0 %v3927_v57 }
 0x76a   : > { %3929 = vmatprep.subr.bf16.mxu0 %v4383_v0 }
 0x76d   : > { %3931 = vmatpush3.bf16.msra.mxu0 %v3930_v1  ;;  %v3210_v1 = vld [vmem:[%s5362_s14] sm:$0x1] }
 0x76e   : > { %3932 = vmatprep.subr.bf16.mxu0 %v4383_v0 }
 0x771   : > { %3934 = vmatpush3.bf16.msra.mxu0 %v3933_v3 }
 0x772   : > { %3935 = vmatprep.subr.bf16.mxu0 %v4383_v0 }
 0x775   : > { %3937 = vmatpush3.bf16.msra.mxu0 %v3936_v56 }
 0x776   : > { %3938 = vmatprep.subr.bf16.mxu0 %v4383_v0 }
 0x779   : > { %3940 = vmatpush3.bf16.msra.mxu0 %v3939_v9 }
 0x77a   : > { %3941 = vmatprep.subr.bf16.mxu0 %v4383_v0 }
 0x77d   : > { %3943 = vmatpush3.bf16.msra.mxu0 %v3942_v63 }
 0x77e   : > { %3944 = vmatprep.subr.bf16.mxu0 %v4383_v0 }
 0x781   : > { %3946 = vmatpush3.bf16.msra.mxu0 %v3945_v16 }
 0x782   : > { %3947 = vmatprep.subr.bf16.mxu0 %v4383_v0 }
 0x785   : > { %3949 = vmatpush3.bf16.msra.mxu0 %v3948_v40 }
 0x7fb   : > { %v3651_v19 = vpop.f32.mrb[16].mxu0 }
 0x7fc   : > { %v3652_v20 = vpop.f32.mrb[17].mxu0 }
 0x7fd   : > { %v3653_v34 = vadd.f32 %v3652_v20, %v3651_v19  ;;  %v3654_v21 = vpop.f32.mrb[18].mxu0 }
 0x7fe   : > { %v3655_v23 = vpop.f32.mrb[19].mxu0 }
 0x7ff   : > { %v3656_v24 = vadd.f32 %v3655_v23, %v3654_v21  ;;  %v2948_v26 = vadd.f32 %v3653_v34, %v3526_v25 }
 0x801   : > { %v2951_v31 = vadd.f32 %v3656_v24, %v3526_v25 }
 0x81b   : > { %v3673_v44 = vpop.f32.mrb[20].mxu0 }
 0x81c   : > { %v3674_v38 = vpop.f32.mrb[21].mxu0 }
 0x81d   : > { %v3675_v28 = vadd.f32 %v3674_v38, %v3673_v44  ;;  %v3676_v29 = vpop.f32.mrb[22].mxu0 }
 0x81e   : > { %v3677_v30 = vpop.f32.mrb[23].mxu0 }
 0x81f   : > { %v2989_v17 = vadd.f32 %v3675_v28, %v2948_v26  ;;  %v3678_v33 = vadd.f32 %v3677_v30, %v3676_v29 }
 0x821   : > { %v2992_v35 = vadd.f32 %v3678_v33, %v2951_v31 }
 0x83b   : > { %v3695_v36 = vpop.f32.mrb[24].mxu0 }
 0x83c   : > { %v3696_v37 = vpop.f32.mrb[25].mxu0 }
 0x83d   : > { %v3697_v8 = vadd.f32 %v3696_v37, %v3695_v36  ;;  %v3698_v14 = vpop.f32.mrb[26].mxu0 }
 0x83e   : > { %v3699_v41 = vpop.f32.mrb[27].mxu0 }
 0x83f   : > { %v3030_v27 = vadd.f32 %v3697_v8, %v2989_v17  ;;  %v3700_v22 = vadd.f32 %v3699_v41, %v3698_v14 }
 0x841   : > { %v3036_v45 = vmax.f32 %v3030_v27, 0.0  ;;  %v3033_v46 = vadd.f32 %v3700_v22, %v2992_v35 }
 0x843   : > { %v3037_v47 = vmax.f32 %v3033_v46, 0.0  ;;  %v3040_v48 = vrot.slane %v3036_v45, 1 }
 0x845   : > { %v3041_v49 = vrot.slane %v3037_v47, 1 }
 0x847   : > { %v3042_v50 = vsel %vm536_vm1, %v3040_v48, %v3041_v49 }
 0x848   : > { %v3044_v52 = vmax.f32 %v3036_v45, %v3042_v50 }
 0x84a   : > { %3828 = vmatpush3.msra.mxu1 %v3044_v52 }
 0x84b   : > { %3830 = vmatmul.mubr.msk.f32.vlgmr.msra.gmra.mrb[20].mxu1 %vm570_vm3, %v4384_v12  ;;  %3950 = vmatprep.subr.bf16.mxu1 %v4383_v0 }
 0x84c   : > { %3875 = vmatprep.mubr.msk.f32.mxu1 %vm4376_vm6, %v4374_v2  ;;  %3952 = vmatpush3.bf16.msra.mxu1 %v3951_v42  ;;  %v3208_v2 = vld [vmem:[%s5361_s13 + $0x10] sm:$0xff] }
 0x84d   : > { %3953 = vmatprep.subr.bf16.mxu1 %v4383_v0  ;;  %v3954_v59 = vpack.c.bf16 %v3209_v55, %v3208_v2 }
 0x850   : > { %3955 = vmatpush3.bf16.msra.mxu1 %v3954_v59 }
 0x91e   : > { %v3114_v43 = vpop.f32.mrb[20].mxu1 }
 0x91f   : > { %v3831_v54 = vpop.f32.mrb[21].mxu1  ;;  %3865 = vmatmul.mubr.f32.vlgmr.msra.gmra.mrb[28].mxu0 %v3114_v43 }
 0x9f2   : > { %v3201_v62 = vpop.f32.mrb[28].mxu0 }
 0x9f3   : > { %v3202_v0 = vadd.f32 %v3201_v62, %v3134_v60  ;;  %v3866_v57 = vpop.f32.mrb[29].mxu0 }
 0x9f5   : > { %v3205_v61 = vmax.f32 %v3202_v0, 0.0 }
 0x9f7   : > { %3876 = vmatmul.mubr.msk.f32.vlgmr.msra.gmra.mrb[22].mxu1 %vm3211_vm11, %v3205_v61 }
 0xaca   : > { %v3281_v6 = vpop.f32.mrb[22].mxu1 }
 0xacb   : > { %v3282_v10 = vadd.f32 %v3281_v6, %v3210_v1  ;;  %v3877_v3 = vpop.f32.mrb[23].mxu1 }
 0xacd   : > { %v3577_v4 = vmul.f32 -1.442695, %v3282_v10  ;;  %3286 = vst.msk [vmem:[%s523_s19] sm:$0x1] %vm3285_vm12, %v3282_v10 }
 0xace   : > { %4288 = shalt.err (!%p4285_p3)
}
 0xacf   : > { %s4289_s19 = scalar_lea.hbm %s5271_s29, 16  ;;  %s4293_s1 = scalar_lea.hbm %s5364_s16, 32 }
 0xad0   : > { %p4290_p4 = scmp.ne.s32.totalorder %s5271_s29, %s4289_s19  ;;  %p4294_p9 = scmp.lt.u32.totalorder %s5271_s29, %s5364_s16 }
 0xad1   : > { %p4295_p10 = scmp.lt.u32.totalorder %s4293_s1, %s4289_s19  ;;  %p4297_p12 = scmp.lt.u32.totalorder %s4289_s19, %s5271_s29 }
 0xad2   : > { %p4291_p7 = pnand %p4290_p4, %p4510_p5 }
 0xad3   : > { %p4296_p11 = por %p4295_p10, %p4294_p9 }
 0xad4   : > { %p4292_p8 = pneg %p4291_p7 }
 0xad5   : > { %p4298_p13 = por %p4297_p12, %p4296_p11 }
 0xad7   : > { %p4299_p0 = pnand %p4298_p13, %p4292_p8 }
 0xad9   : > { %4302 = shalt.err (!%p4299_p0)
}
 0xada   : > { %3967 = dma.vmem_to_hbm [thread:$0]  (%p4510_p5), %s5273_s20, 16, %s5271_s29, %s3299_s30   ;;  %4271 = vpow2.f32 %v3577_v4 }
 0xadb   : > { %s517_s4 = scalar_lea.vmem [#allocation2], %s5259_s23  ;;  %s5383_s18 = sshll.u32 %s4493_s25, 4 }
 0xadc   : > { %s3311_s2 = sshll.u32 %s517_s4, 4  ;;  %s5304_s28 = scalar_lea.hbm %s5363_s15, %s5383_s18  ;;  %s5306_s2 = int_to_ptr.vmem [resolvable:$true] %s3311_s2 }
 0xadd   : > { %s3295_s20 = scalar_lea.sflag [#allocation3], %s5259_s23  ;;  %s4303_s29 = scalar_lea.vmem %s5306_s2, 16 }
 0xade   : > { %p4304_p1 = scmp.ne.s32.totalorder %s5306_s2, %s4303_s29  ;;  %s4386_s25 = smov [#allocation2]  }
 0xadf   : > { %s4307_s30 = sshll.u32 %s4386_s25, 4  ;;  %s4308_s30 = int_to_ptr.vmem [resolvable:$false] %s4307_s30 }
 0xae0   : > { %p4305_p2 = pnand %p4304_p1, %p4510_p5  ;;  %s4309_s1 = scalar_lea.vmem %s4308_s30, 32 }
 0xae1   : > { %p4310_p4 = scmp.lt.s32.totalorder %s5306_s2, %s4308_s30  ;;  %p4311_p7 = scmp.lt.s32.totalorder %s4309_s1, %s4303_s29 }
 0xae2   : > { %p4306_p3 = pneg %p4305_p2 }
 0xae3   : > { %p4312_p8 = por %p4311_p7, %p4310_p4 }
 0xae4   : > { %v4272_v5 = vpop.eup %4271 }
 0xae5   : > { %v3290_v56 = vadd.f32 1.0, %v4272_v5  ;;  %p4313_p9 = pnand %p4312_p8, %p4306_p3 }
 0xae7   : > { %4273 = vrcp.f32 %v3290_v56 }
 0xaf1   : > { %v4274_v51 = vpop.eup %4273 }
 0xaf2   : > { %3293 = vst.msk [vmem:[%s517_s4] sm:$0x1] %vm3285_vm12, %v4274_v51 }
 0xaf3   : > { %4316 = shalt.err (!%p4313_p9)
}
 0xaf4   : > { %s4317_s23 = scalar_lea.hbm %s5304_s28, 16  ;;  %s4321_s18 = scalar_lea.hbm %s5363_s15, 32 }
 0xaf5   : > { %p4318_p10 = scmp.ne.s32.totalorder %s5304_s28, %s4317_s23  ;;  %p4322_p13 = scmp.lt.u32.totalorder %s5304_s28, %s5363_s15 }
 0xaf6   : > { %p4323_p0 = scmp.lt.u32.totalorder %s4321_s18, %s4317_s23  ;;  %p4325_p2 = scmp.lt.u32.totalorder %s4317_s23, %s5304_s28 }
 0xaf7   : > { %p4319_p11 = pnand %p4318_p10, %p4510_p5 }
 0xaf8   : > { %p4324_p1 = por %p4323_p0, %p4322_p13 }
 0xaf9   : > { %p4320_p12 = pneg %p4319_p11 }
 0xafa   : > { %p4326_p3 = por %p4325_p2, %p4324_p1 }
 0xafc   : > { %p4327_p4 = pnand %p4326_p3, %p4320_p12 }
 0xafe   : > { %4330 = shalt.err (!%p4327_p4)
}
 0xaff   : > { %3966 = dma.vmem_to_hbm [thread:$0]  (%p4510_p5), %s5306_s2, 16, %s5304_s28, %s3295_s20  }
 0xb00 PF: > { %p3977_p7 = scmp.ge.s32.totalorder %s4369_s24, 2  ;;  %s3336_s29 = sand.u32 1, %s4357_s21  }
 0xb01   : > { %s3337_s25 = scalar_lea.sflag [#allocation3], %s3336_s29 }
 0xb02   : > { %p3971_p8 = pnand %p3977_p7, %p4514_p6 }
 0xb04   : > { %4348 = dma.done.wait (!%p3971_p8), %s3337_s25, 16  }
 0xb05   : > { %4350 = vsyncadd (!%p3971_p8), %s3337_s25, 4294967280  ;;  %s3345_s30 = scalar_lea.sflag [#allocation5], %s3336_s29 }
 0xb06   : > { %4352 = dma.done.wait (!%p3971_p8), %s3345_s30, 16  }
 0xb07   : > { %4354 = vsyncadd (!%p3971_p8), %s3345_s30, 4294967280  ;;  %s5384_s0 = sld [smem:[#allocation8_spill]]  ;;  %s5385_s23 = sld [smem:[#allocation9_spill]] }
 0xb08   : > { %p30_p5 = scmp.ge.s32.totalorder %s4497_s27, 4   ;;  %s5386_s21 = smov %s4361_s22 }
 0xb09   : > { %s5388_s24 = smov %s4497_s27 }
 0xb0a   :  { %32 = sbr.rel (!%p30_p5) target bundleno = 11 (0xb), region = 132 }
 0xb0d   : > { %s5387_s22 = smov %s5384_s0 }
 0xb11   :  { %3349 = vsyncpa [#allocation3], 1 }
 0xb12   :  { %3351 = vsyncpa [#allocation3 + $0x1], 1 }
 0xb13   :  { %3352 = vsyncpa [#allocation5], 1 }
 0xb14   :  { %3354 = vsyncpa [#allocation5 + $0x1], 1 }

</bundles_post_ra>
